<compile_context>
chip_gen: v5e
topology: v5e:2x2
jax: 0.10.0
libtpu: 0.0.40
codegen_flags: <defaults>
</compile_context>

<pallas_src>
import functools

import jax
import jax.numpy as jnp
from jax.experimental import pallas as pl
from jax.experimental.pallas import tpu as pltpu


# ---------------------------------------------------------------------------
# Single fused kernel: embedding -> n_layers x (MHA + residual + LayerNorm)
#                      -> proj(L->1) -> relu(predict1) -> predict2
# ---------------------------------------------------------------------------
def fused_transformer_kernel(ids_ref, glove_ref,
                             wqkv_ref, bqkv_ref, wo_ref, bo_ref,
                             gamma_ref, beta_ref,
                             wp_ref, bp_ref, w1_ref, b1_ref, w2_ref, b2_ref,
                             o_ref, *, n_layers, n_heads, seq_len):
    f32 = jnp.float32
    bf16 = jnp.bfloat16

    M = ids_ref.shape[0]                 # B * L flattened tokens
    vocab_pad, H = glove_ref.shape
    d = H // n_heads

    # ---- embedding lookup as a one-hot matmul (MXU, no gather) ----
    # Out-of-range ids silently map to a zero embedding row (padded rows are 0).
    ids = ids_ref[...]                                                 # (M, 1) int32
    vocab_iota = jax.lax.broadcasted_iota(jnp.int32, (M, vocab_pad), 1)
    onehot = (vocab_iota == ids).astype(bf16)                          # (M, Vpad) bf16
    x = jnp.dot(onehot, glove_ref[...],
                preferred_element_type=f32)                            # (M, H) f32

    # ---- block-diagonal attention bias, generated in-kernel (no HBM input) ----
    # batch_id(i) = floor(i / L); f32 floor-division is exact for these ranges
    # and avoids relying on vector integer-divide lowering.
    rid = jax.lax.broadcasted_iota(jnp.int32, (M, M), 0).astype(f32)
    cid = jax.lax.broadcasted_iota(jnp.int32, (M, M), 1).astype(f32)
    rb = jnp.floor(rid / f32(seq_len))
    cb = jnp.floor(cid / f32(seq_len))
    attn_bias = jnp.where(rb == cb, f32(0.0), f32(-1e30))[None]        # (1, M, M)

    scale = 1.0 / (d ** 0.5)
    inv_h = 1.0 / H

    for i in range(n_layers):            # static unroll (fine at n_layers=2)
        # ---- fused QKV projection: one lane-dense (M,H) @ (H,3H) matmul ----
        qkv = jnp.dot(x.astype(bf16), wqkv_ref[i],
                      preferred_element_type=f32) + bqkv_ref[i]        # (M, 3H) f32

        # split into per-head (nh, M, d) tensors (static lane slices + stack;
        # Mosaic only supports minor-dims transposes, so no (1,0,2) transpose)
        heads = [qkv[:, j * d:(j + 1) * d] for j in range(3 * n_heads)]
        q = jnp.stack(heads[:n_heads], axis=0).astype(bf16)            # (nh, M, d)
        k = jnp.stack(heads[n_heads:2 * n_heads], axis=0).astype(bf16)
        v = jnp.stack(heads[2 * n_heads:], axis=0).astype(bf16)

        # ---- attention scores + f32 softmax ----
        s = jnp.einsum('nqd,nkd->nqk', q, k,
                       preferred_element_type=f32) * scale             # (nh, M, M) f32
        s = s + attn_bias
        s = s - jnp.max(s, axis=-1, keepdims=True)
        p = jnp.exp(s)
        p = p * pl.reciprocal(jnp.sum(p, axis=-1, keepdims=True), approx=True)

        # ---- context + single dense output projection ----
        ctx = jnp.einsum('nqk,nkd->nqd', p.astype(bf16), v,
                         preferred_element_type=f32)                   # (nh, M, d) f32
        merged = jnp.concatenate([ctx[h] for h in range(n_heads)],
                                 axis=-1)                              # (M, H) f32
        attn = jnp.dot(merged.astype(bf16), wo_ref[i],
                       preferred_element_type=f32) + bo_ref[i]         # (M, H) f32

        # ---- residual + single-pass LayerNorm (f32) ----
        y = x + attn
        s1 = jnp.sum(y, axis=-1, keepdims=True)
        s2 = jnp.sum(y * y, axis=-1, keepdims=True)
        mu = s1 * inv_h
        var = s2 * inv_h - mu * mu
        yn = (y - mu) * jax.lax.rsqrt(var + 1e-5)
        x = yn * gamma_ref[i] + beta_ref[i]                            # (M, H) f32

    # ---- head: proj over sequence, relu(predict1), predict2 ----
    pooled = jnp.dot(wp_ref[...], x.astype(bf16),
                     preferred_element_type=f32) + bp_ref[...]         # (B, H)
    z = jnp.maximum(
        jnp.dot(pooled.astype(bf16), w1_ref[...],
                preferred_element_type=f32) + b1_ref[...], 0.0)        # (B, 2C)
    logits = (jnp.dot(z.astype(bf16), w2_ref[...],
                      preferred_element_type=f32) + b2_ref[...])       # (B, C)
    o_ref[...] = logits.astype(o_ref.dtype)


def transformer_forward(src_ids, packed, *, n_layers, n_heads):
    """src_ids: (B, L) int32 -> logits (B, class_size) f32. One pallas_call."""
    (glove, wqkv_s, bqkv_s, wo_s, bo_s, gamma_s, beta_s,
     wp_mat, bp, w1, b1, w2, b2) = packed
    B, L = src_ids.shape
    M = B * L
    C = w2.shape[1]
    ids2 = src_ids.reshape(M, 1).astype(jnp.int32)

    def full(a):
        nd = a.ndim
        return pl.BlockSpec(a.shape, lambda i, nd=nd: (0,) * nd)

    args = (ids2, glove, wqkv_s, bqkv_s, wo_s, bo_s, gamma_s, beta_s,
            wp_mat, bp, w1, b1, w2, b2)

    return pl.pallas_call(
        functools.partial(fused_transformer_kernel,
                          n_layers=n_layers, n_heads=n_heads, seq_len=L),
        out_shape=jax.ShapeDtypeStruct((B, C), jnp.float32),
        grid_spec=pltpu.PrefetchScalarGridSpec(
            num_scalar_prefetch=0,
            grid=(1,),                                   # single grid step
            in_specs=[full(a) for a in args],
            out_specs=pl.BlockSpec((B, C), lambda i: (0, 0)),
        ),
        compiler_params=pltpu.CompilerParams(
            dimension_semantics=("arbitrary",)),
    )(*args)


# ---------------------------------------------------------------------------
# Parameter init (deterministic, PyTorch-style layout) + one-time packing
# ---------------------------------------------------------------------------
def init_params(key, vocab, hid_dim, n_layers, class_size, max_length):
    keys = jax.random.split(key, 4 + n_layers)
    glove = jax.random.normal(keys[0], (vocab, hid_dim), jnp.float32) * 0.1

    def linear(k, fan_in, fan_out):
        kw, kb = jax.random.split(k)
        w = jax.random.normal(kw, (fan_in, fan_out), jnp.float32) * 0.05   # (in, out)
        b = jax.random.normal(kb, (1, fan_out), jnp.float32) * 0.01
        return w, b

    layer_params = []
    for i in range(n_layers):
        lk = jax.random.split(keys[1 + i], 4)
        wq, bq = linear(lk[0], hid_dim, hid_dim)
        wk, bk = linear(lk[1], hid_dim, hid_dim)
        wv, bv = linear(lk[2], hid_dim, hid_dim)
        wo, bo = linear(lk[3], hid_dim, hid_dim)
        gamma = jnp.ones((1, hid_dim), jnp.float32)
        beta = jnp.zeros((1, hid_dim), jnp.float32)
        layer_params.append((wq, bq, wk, bk, wv, bv, wo, bo, gamma, beta))

    wp_t, bp_t = linear(keys[1 + n_layers], max_length, 1)   # proj: Linear(L, 1)
    wp = wp_t.T                                              # (1, L)
    bp = bp_t                                                # (1, 1)
    w1, b1 = linear(keys[2 + n_layers], hid_dim, class_size * 2)
    w2, b2 = linear(keys[3 + n_layers], class_size * 2, class_size)
    head_params = (wp, bp, w1, b1, w2, b2)
    return glove, layer_params, head_params


def pack_params(glove, layer_params, head_params, *, batch):
    """One-time repack into kernel layout (fused QKV, bf16 MXU weights)."""
    vocab, H = glove.shape

    # pad vocab to a multiple of 128 lanes so the one-hot contraction is lane-dense
    vocab_pad = (vocab + 127) // 128 * 128
    glove_p = jnp.pad(glove, ((0, vocab_pad - vocab), (0, 0))).astype(jnp.bfloat16)

    wqkv_l, bqkv_l, wo_l, bo_l, g_l, be_l = [], [], [], [], [], []
    for (wq, bq, wk, bk, wv, bv, wo, bo, gamma, beta) in layer_params:
        wqkv_l.append(jnp.concatenate([wq, wk, wv], axis=1))   # (H, 3H)
        bqkv_l.append(jnp.concatenate([bq, bk, bv], axis=1))   # (1, 3H)
        wo_l.append(wo)
        bo_l.append(bo)
        g_l.append(gamma)
        be_l.append(beta)
    wqkv_s = jnp.stack(wqkv_l, axis=0).astype(jnp.bfloat16)    # (nl, H, 3H) bf16
    bqkv_s = jnp.stack(bqkv_l, axis=0)                         # (nl, 1, 3H) f32
    wo_s = jnp.stack(wo_l, axis=0).astype(jnp.bfloat16)        # (nl, H, H)  bf16
    bo_s = jnp.stack(bo_l, axis=0)                             # (nl, 1, H)  f32
    g_s = jnp.stack(g_l, axis=0)                               # (nl, 1, H)  f32
    be_s = jnp.stack(be_l, axis=0)                             # (nl, 1, H)  f32

    wp, bp, w1, b1, w2, b2 = head_params
    # proj(L -> 1) applied per batch element over the flattened (B*L, H) slab
    wp_mat = jnp.kron(jnp.eye(batch, dtype=jnp.float32), wp).astype(jnp.bfloat16)  # (B, M)

    return (glove_p, wqkv_s, bqkv_s, wo_s, bo_s, g_s, be_s,
            wp_mat, bp, w1.astype(jnp.bfloat16), b1,
            w2.astype(jnp.bfloat16), b2)


if __name__ == "__main__":
    # small shapes consistent with the module
    B, L, H = 2, 8, 32          # batch, max_length (seq), hid_dim
    n_layers, n_heads = 2, 4
    vocab, class_size = 50, 4

    key = jax.random.PRNGKey(0)
    kp, kx = jax.random.split(key)
    glove, layer_params, head_params = init_params(kp, vocab, H, n_layers, class_size, L)
    packed = pack_params(glove, layer_params, head_params, batch=B)
    packed = jax.tree_util.tree_map(jax.block_until_ready, packed)  # one-time, off hot path

    src_ids = jax.random.randint(kx, (B, L), 0, vocab, dtype=jnp.int32)

    out = transformer_forward(src_ids, packed, n_layers=n_layers, n_heads=n_heads)
    out = jax.block_until_ready(out)
    assert out.shape == (B, class_size), out.shape
    print("KERNEL_OK")
</pallas_src>

<mosaic_0001>
module attributes {stable_mosaic.version = 11 : i64} {
  func.func @fused_transformer_kernel(%arg0: i32, %arg1: memref<16x1xi32, #tpu.memory_space<vmem>>, %arg2: memref<128x32xbf16, #tpu.memory_space<vmem>>, %arg3: memref<2x32x96xbf16, #tpu.memory_space<vmem>>, %arg4: memref<2x1x96xf32, #tpu.memory_space<vmem>>, %arg5: memref<2x32x32xbf16, #tpu.memory_space<vmem>>, %arg6: memref<2x1x32xf32, #tpu.memory_space<vmem>>, %arg7: memref<2x1x32xf32, #tpu.memory_space<vmem>>, %arg8: memref<2x1x32xf32, #tpu.memory_space<vmem>>, %arg9: memref<2x16xbf16, #tpu.memory_space<vmem>>, %arg10: memref<1x1xf32, #tpu.memory_space<vmem>>, %arg11: memref<32x8xbf16, #tpu.memory_space<vmem>>, %arg12: memref<1x8xf32, #tpu.memory_space<vmem>>, %arg13: memref<8x4xbf16, #tpu.memory_space<vmem>>, %arg14: memref<1x4xf32, #tpu.memory_space<vmem>>, %arg15: memref<2x4xf32, #tpu.memory_space<vmem>>) attributes {dimension_semantics = [#tpu.dimension_semantics<arbitrary>], iteration_bounds = array<i64: 1>, scalar_prefetch = 0 : i64, scratch_operands = 0 : i64, tpu.core_type = #tpu.core_type<tc>, window_params = [{pipeline_mode = #tpu.pipeline_mode<synchronous>, transform_indices = @transform_0, window_bounds = array<i64: 16, 1>}, {pipeline_mode = #tpu.pipeline_mode<synchronous>, transform_indices = @transform_1, window_bounds = array<i64: 128, 32>}, {pipeline_mode = #tpu.pipeline_mode<synchronous>, transform_indices = @transform_2, window_bounds = array<i64: 2, 32, 96>}, {pipeline_mode = #tpu.pipeline_mode<synchronous>, transform_indices = @transform_3, window_bounds = array<i64: 2, 1, 96>}, {pipeline_mode = #tpu.pipeline_mode<synchronous>, transform_indices = @transform_4, window_bounds = array<i64: 2, 32, 32>}, {pipeline_mode = #tpu.pipeline_mode<synchronous>, transform_indices = @transform_5, window_bounds = array<i64: 2, 1, 32>}, {pipeline_mode = #tpu.pipeline_mode<synchronous>, transform_indices = @transform_6, window_bounds = array<i64: 2, 1, 32>}, {pipeline_mode = #tpu.pipeline_mode<synchronous>, transform_indices = @transform_7, window_bounds = array<i64: 2, 1, 32>}, {pipeline_mode = #tpu.pipeline_mode<synchronous>, transform_indices = @transform_8, window_bounds = array<i64: 2, 16>}, {pipeline_mode = #tpu.pipeline_mode<synchronous>, transform_indices = @transform_9, window_bounds = array<i64: 1, 1>}, {pipeline_mode = #tpu.pipeline_mode<synchronous>, transform_indices = @transform_10, window_bounds = array<i64: 32, 8>}, {pipeline_mode = #tpu.pipeline_mode<synchronous>, transform_indices = @transform_11, window_bounds = array<i64: 1, 8>}, {pipeline_mode = #tpu.pipeline_mode<synchronous>, transform_indices = @transform_12, window_bounds = array<i64: 8, 4>}, {pipeline_mode = #tpu.pipeline_mode<synchronous>, transform_indices = @transform_13, window_bounds = array<i64: 1, 4>}, {pipeline_mode = #tpu.pipeline_mode<synchronous>, transform_indices = @transform_14, window_bounds = array<i64: 2, 4>}]} {
    %c0 = arith.constant 0 : index
    %c0_0 = arith.constant 0 : index
    %0 = vector.load %arg1[%c0, %c0_0] : memref<16x1xi32, #tpu.memory_space<vmem>>, vector<16x1xi32>
    %1 = tpu.iota {dimensions = array<i32: 1>} : vector<16x128xi32>
    %2 = vector.broadcast %0 : vector<16x1xi32> to vector<16x128xi32>
    %3 = arith.cmpi eq, %1, %2 : vector<16x128xi32>
    %4 = arith.extui %3 : vector<16x128xi1> to vector<16x128xi32>
    %5 = arith.sitofp %4 : vector<16x128xi32> to vector<16x128xf32>
    %6 = arith.truncf %5 : vector<16x128xf32> to vector<16x128xbf16>
    %c0_1 = arith.constant 0 : index
    %c0_2 = arith.constant 0 : index
    %7 = vector.load %arg2[%c0_1, %c0_2] : memref<128x32xbf16, #tpu.memory_space<vmem>>, vector<128x32xbf16>
    %cst = arith.constant dense<0.000000e+00> : vector<16x32xf32>
    %8 = tpu.matmul %6, %7, %cst {dimension_numbers = #tpu.dot_dimension_numbers<[1], [0], [0], [1], [0, 0, 1, 1], [], []>} : vector<16x128xbf16>, vector<128x32xbf16>, vector<16x32xf32> -> vector<16x32xf32>
    %9 = tpu.iota {dimensions = array<i32: 0>} : vector<16x16xi32>
    %10 = arith.sitofp %9 : vector<16x16xi32> to vector<16x16xf32>
    %11 = tpu.iota {dimensions = array<i32: 1>} : vector<16x16xi32>
    %12 = arith.sitofp %11 : vector<16x16xi32> to vector<16x16xf32>
    %cst_3 = arith.constant 8.000000e+00 : f32
    %13 = vector.broadcast %cst_3 : f32 to vector<16x16xf32>
    %14 = arith.divf %10, %13 : vector<16x16xf32>
    %15 = math.floor %14 : vector<16x16xf32>
    %cst_4 = arith.constant 8.000000e+00 : f32
    %16 = vector.broadcast %cst_4 : f32 to vector<16x16xf32>
    %17 = arith.divf %12, %16 : vector<16x16xf32>
    %18 = math.floor %17 : vector<16x16xf32>
    %19 = arith.cmpf oeq, %15, %18 : vector<16x16xf32>
    %cst_5 = arith.constant 0.000000e+00 : f32
    %cst_6 = arith.constant -1.000000e+30 : f32
    %20 = vector.broadcast %cst_5 : f32 to vector<16x16xf32>
    %21 = vector.broadcast %cst_6 : f32 to vector<16x16xf32>
    %22 = arith.select %19, %20, %21 : vector<16x16xi1>, vector<16x16xf32>
    %23 = vector.shape_cast %22 : vector<16x16xf32> to vector<1x16x16xf32>
    %24 = arith.truncf %8 : vector<16x32xf32> to vector<16x32xbf16>
    %c0_7 = arith.constant 0 : index
    %c0_8 = arith.constant 0 : index
    %c0_9 = arith.constant 0 : index
    %25 = vector.load %arg3[%c0_7, %c0_8, %c0_9] : memref<2x32x96xbf16, #tpu.memory_space<vmem>>, vector<1x32x96xbf16>
    %26 = vector.shape_cast %25 : vector<1x32x96xbf16> to vector<32x96xbf16>
    %cst_10 = arith.constant dense<0.000000e+00> : vector<16x96xf32>
    %27 = tpu.matmul %24, %26, %cst_10 {dimension_numbers = #tpu.dot_dimension_numbers<[1], [0], [0], [1], [0, 0, 1, 1], [], []>} : vector<16x32xbf16>, vector<32x96xbf16>, vector<16x96xf32> -> vector<16x96xf32>
    %c0_11 = arith.constant 0 : index
    %c0_12 = arith.constant 0 : index
    %c0_13 = arith.constant 0 : index
    %28 = vector.load %arg4[%c0_11, %c0_12, %c0_13] : memref<2x1x96xf32, #tpu.memory_space<vmem>>, vector<1x1x96xf32>
    %29 = vector.shape_cast %28 : vector<1x1x96xf32> to vector<1x96xf32>
    %30 = vector.broadcast %29 : vector<1x96xf32> to vector<16x96xf32>
    %31 = arith.addf %27, %30 : vector<16x96xf32>
    %32 = vector.extract_strided_slice %31 {offsets = [0, 0], sizes = [16, 8], strides = [1, 1]} : vector<16x96xf32> to vector<16x8xf32>
    %33 = vector.extract_strided_slice %31 {offsets = [0, 8], sizes = [16, 8], strides = [1, 1]} : vector<16x96xf32> to vector<16x8xf32>
    %34 = vector.extract_strided_slice %31 {offsets = [0, 16], sizes = [16, 8], strides = [1, 1]} : vector<16x96xf32> to vector<16x8xf32>
    %35 = vector.extract_strided_slice %31 {offsets = [0, 24], sizes = [16, 8], strides = [1, 1]} : vector<16x96xf32> to vector<16x8xf32>
    %36 = vector.extract_strided_slice %31 {offsets = [0, 32], sizes = [16, 8], strides = [1, 1]} : vector<16x96xf32> to vector<16x8xf32>
    %37 = vector.extract_strided_slice %31 {offsets = [0, 40], sizes = [16, 8], strides = [1, 1]} : vector<16x96xf32> to vector<16x8xf32>
    %38 = vector.extract_strided_slice %31 {offsets = [0, 48], sizes = [16, 8], strides = [1, 1]} : vector<16x96xf32> to vector<16x8xf32>
    %39 = vector.extract_strided_slice %31 {offsets = [0, 56], sizes = [16, 8], strides = [1, 1]} : vector<16x96xf32> to vector<16x8xf32>
    %40 = vector.extract_strided_slice %31 {offsets = [0, 64], sizes = [16, 8], strides = [1, 1]} : vector<16x96xf32> to vector<16x8xf32>
    %41 = vector.extract_strided_slice %31 {offsets = [0, 72], sizes = [16, 8], strides = [1, 1]} : vector<16x96xf32> to vector<16x8xf32>
    %42 = vector.extract_strided_slice %31 {offsets = [0, 80], sizes = [16, 8], strides = [1, 1]} : vector<16x96xf32> to vector<16x8xf32>
    %43 = vector.extract_strided_slice %31 {offsets = [0, 88], sizes = [16, 8], strides = [1, 1]} : vector<16x96xf32> to vector<16x8xf32>
    %44 = vector.shape_cast %32 : vector<16x8xf32> to vector<1x16x8xf32>
    %45 = vector.shape_cast %33 : vector<16x8xf32> to vector<1x16x8xf32>
    %46 = vector.shape_cast %34 : vector<16x8xf32> to vector<1x16x8xf32>
    %47 = vector.shape_cast %35 : vector<16x8xf32> to vector<1x16x8xf32>
    %48 = tpu.concatenate %44, %45, %46, %47 in 0 : vector<1x16x8xf32>, vector<1x16x8xf32>, vector<1x16x8xf32>, vector<1x16x8xf32> -> vector<4x16x8xf32>
    %49 = arith.truncf %48 : vector<4x16x8xf32> to vector<4x16x8xbf16>
    %50 = vector.shape_cast %36 : vector<16x8xf32> to vector<1x16x8xf32>
    %51 = vector.shape_cast %37 : vector<16x8xf32> to vector<1x16x8xf32>
    %52 = vector.shape_cast %38 : vector<16x8xf32> to vector<1x16x8xf32>
    %53 = vector.shape_cast %39 : vector<16x8xf32> to vector<1x16x8xf32>
    %54 = tpu.concatenate %50, %51, %52, %53 in 0 : vector<1x16x8xf32>, vector<1x16x8xf32>, vector<1x16x8xf32>, vector<1x16x8xf32> -> vector<4x16x8xf32>
    %55 = arith.truncf %54 : vector<4x16x8xf32> to vector<4x16x8xbf16>
    %56 = vector.shape_cast %40 : vector<16x8xf32> to vector<1x16x8xf32>
    %57 = vector.shape_cast %41 : vector<16x8xf32> to vector<1x16x8xf32>
    %58 = vector.shape_cast %42 : vector<16x8xf32> to vector<1x16x8xf32>
    %59 = vector.shape_cast %43 : vector<16x8xf32> to vector<1x16x8xf32>
    %60 = tpu.concatenate %56, %57, %58, %59 in 0 : vector<1x16x8xf32>, vector<1x16x8xf32>, vector<1x16x8xf32>, vector<1x16x8xf32> -> vector<4x16x8xf32>
    %61 = arith.truncf %60 : vector<4x16x8xf32> to vector<4x16x8xbf16>
    "tpu.trace_start"() <{level = 10 : i32, message = "nqd,nkd->nqk"}> : () -> ()
    %cst_14 = arith.constant dense<0.000000e+00> : vector<4x16x16xf32>
    %62 = tpu.matmul %49, %55, %cst_14 {dimension_numbers = #tpu.dot_dimension_numbers<[2], [2], [1], [1], [0, 0, 0, 1, 1, 1], [0], [0]>} : vector<4x16x8xbf16>, vector<4x16x8xbf16>, vector<4x16x16xf32> -> vector<4x16x16xf32>
    "tpu.trace_stop"() : () -> ()
    %cst_15 = arith.constant 0.353553385 : f32
    %63 = vector.broadcast %cst_15 : f32 to vector<4x16x16xf32>
    %64 = arith.mulf %62, %63 : vector<4x16x16xf32>
    %65 = vector.broadcast %23 : vector<1x16x16xf32> to vector<4x16x16xf32>
    %66 = arith.addf %64, %65 : vector<4x16x16xf32>
    %cst_16 = arith.constant dense<0xFF800000> : vector<4x16xf32>
    %67 = vector.multi_reduction <maximumf>, %66, %cst_16 [2] : vector<4x16x16xf32> to vector<4x16xf32>
    %68 = vector.shape_cast %67 : vector<4x16xf32> to vector<4x16x1xf32>
    %69 = vector.broadcast %68 : vector<4x16x1xf32> to vector<4x16x16xf32>
    %70 = arith.subf %66, %69 : vector<4x16x16xf32>
    %71 = math.exp %70 : vector<4x16x16xf32>
    %cst_17 = arith.constant dense<0.000000e+00> : vector<4x16xf32>
    %72 = vector.multi_reduction <add>, %71, %cst_17 [2] : vector<4x16x16xf32> to vector<4x16xf32>
    %73 = vector.shape_cast %72 : vector<4x16xf32> to vector<4x16x1xf32>
    %74 = tpu.reciprocal %73 {approx = true} : vector<4x16x1xf32> -> vector<4x16x1xf32>
    %75 = vector.broadcast %74 : vector<4x16x1xf32> to vector<4x16x16xf32>
    %76 = arith.mulf %71, %75 : vector<4x16x16xf32>
    %77 = arith.truncf %76 : vector<4x16x16xf32> to vector<4x16x16xbf16>
    "tpu.trace_start"() <{level = 10 : i32, message = "nqk,nkd->nqd"}> : () -> ()
    %cst_18 = arith.constant dense<0.000000e+00> : vector<4x16x8xf32>
    %78 = tpu.matmul %77, %61, %cst_18 {dimension_numbers = #tpu.dot_dimension_numbers<[2], [1], [1], [2], [0, 0, 0, 1, 1, 2], [0], [0]>} : vector<4x16x16xbf16>, vector<4x16x8xbf16>, vector<4x16x8xf32> -> vector<4x16x8xf32>
    "tpu.trace_stop"() : () -> ()
    %79 = vector.extract_strided_slice %78 {offsets = [0, 0, 0], sizes = [1, 16, 8], strides = [1, 1, 1]} : vector<4x16x8xf32> to vector<1x16x8xf32>
    %80 = vector.shape_cast %79 : vector<1x16x8xf32> to vector<16x8xf32>
    %81 = vector.extract_strided_slice %78 {offsets = [1, 0, 0], sizes = [1, 16, 8], strides = [1, 1, 1]} : vector<4x16x8xf32> to vector<1x16x8xf32>
    %82 = vector.shape_cast %81 : vector<1x16x8xf32> to vector<16x8xf32>
    %83 = vector.extract_strided_slice %78 {offsets = [2, 0, 0], sizes = [1, 16, 8], strides = [1, 1, 1]} : vector<4x16x8xf32> to vector<1x16x8xf32>
    %84 = vector.shape_cast %83 : vector<1x16x8xf32> to vector<16x8xf32>
    %85 = vector.extract_strided_slice %78 {offsets = [3, 0, 0], sizes = [1, 16, 8], strides = [1, 1, 1]} : vector<4x16x8xf32> to vector<1x16x8xf32>
    %86 = vector.shape_cast %85 : vector<1x16x8xf32> to vector<16x8xf32>
    %87 = tpu.concatenate %80, %82, %84, %86 in 1 : vector<16x8xf32>, vector<16x8xf32>, vector<16x8xf32>, vector<16x8xf32> -> vector<16x32xf32>
    %88 = arith.truncf %87 : vector<16x32xf32> to vector<16x32xbf16>
    %c0_19 = arith.constant 0 : index
    %c0_20 = arith.constant 0 : index
    %c0_21 = arith.constant 0 : index
    %89 = vector.load %arg5[%c0_19, %c0_20, %c0_21] : memref<2x32x32xbf16, #tpu.memory_space<vmem>>, vector<1x32x32xbf16>
    %90 = vector.shape_cast %89 : vector<1x32x32xbf16> to vector<32x32xbf16>
    %cst_22 = arith.constant dense<0.000000e+00> : vector<16x32xf32>
    %91 = tpu.matmul %88, %90, %cst_22 {dimension_numbers = #tpu.dot_dimension_numbers<[1], [0], [0], [1], [0, 0, 1, 1], [], []>} : vector<16x32xbf16>, vector<32x32xbf16>, vector<16x32xf32> -> vector<16x32xf32>
    %c0_23 = arith.constant 0 : index
    %c0_24 = arith.constant 0 : index
    %c0_25 = arith.constant 0 : index
    %92 = vector.load %arg6[%c0_23, %c0_24, %c0_25] : memref<2x1x32xf32, #tpu.memory_space<vmem>>, vector<1x1x32xf32>
    %93 = vector.shape_cast %92 : vector<1x1x32xf32> to vector<1x32xf32>
    %94 = vector.broadcast %93 : vector<1x32xf32> to vector<16x32xf32>
    %95 = arith.addf %91, %94 : vector<16x32xf32>
    %96 = arith.addf %8, %95 : vector<16x32xf32>
    %cst_26 = arith.constant dense<0.000000e+00> : vector<16xf32>
    %97 = vector.multi_reduction <add>, %96, %cst_26 [1] : vector<16x32xf32> to vector<16xf32>
    %98 = vector.shape_cast %97 : vector<16xf32> to vector<16x1xf32>
    %99 = arith.mulf %96, %96 : vector<16x32xf32>
    %cst_27 = arith.constant dense<0.000000e+00> : vector<16xf32>
    %100 = vector.multi_reduction <add>, %99, %cst_27 [1] : vector<16x32xf32> to vector<16xf32>
    %101 = vector.shape_cast %100 : vector<16xf32> to vector<16x1xf32>
    %cst_28 = arith.constant 3.125000e-02 : f32
    %102 = vector.broadcast %cst_28 : f32 to vector<16x1xf32>
    %103 = arith.mulf %98, %102 : vector<16x1xf32>
    %cst_29 = arith.constant 3.125000e-02 : f32
    %104 = vector.broadcast %cst_29 : f32 to vector<16x1xf32>
    %105 = arith.mulf %101, %104 : vector<16x1xf32>
    %106 = arith.mulf %103, %103 : vector<16x1xf32>
    %107 = arith.subf %105, %106 : vector<16x1xf32>
    %108 = vector.broadcast %103 : vector<16x1xf32> to vector<16x32xf32>
    %109 = arith.subf %96, %108 : vector<16x32xf32>
    %cst_30 = arith.constant 9.99999974E-6 : f32
    %110 = vector.broadcast %cst_30 : f32 to vector<16x1xf32>
    %111 = arith.addf %107, %110 : vector<16x1xf32>
    %112 = math.rsqrt %111 : vector<16x1xf32>
    %113 = vector.broadcast %112 : vector<16x1xf32> to vector<16x32xf32>
    %114 = arith.mulf %109, %113 : vector<16x32xf32>
    %c0_31 = arith.constant 0 : index
    %c0_32 = arith.constant 0 : index
    %c0_33 = arith.constant 0 : index
    %115 = vector.load %arg7[%c0_31, %c0_32, %c0_33] : memref<2x1x32xf32, #tpu.memory_space<vmem>>, vector<1x1x32xf32>
    %116 = vector.shape_cast %115 : vector<1x1x32xf32> to vector<1x32xf32>
    %117 = vector.broadcast %116 : vector<1x32xf32> to vector<16x32xf32>
    %118 = arith.mulf %114, %117 : vector<16x32xf32>
    %c0_34 = arith.constant 0 : index
    %c0_35 = arith.constant 0 : index
    %c0_36 = arith.constant 0 : index
    %119 = vector.load %arg8[%c0_34, %c0_35, %c0_36] : memref<2x1x32xf32, #tpu.memory_space<vmem>>, vector<1x1x32xf32>
    %120 = vector.shape_cast %119 : vector<1x1x32xf32> to vector<1x32xf32>
    %121 = vector.broadcast %120 : vector<1x32xf32> to vector<16x32xf32>
    %122 = arith.addf %118, %121 : vector<16x32xf32>
    %123 = arith.truncf %122 : vector<16x32xf32> to vector<16x32xbf16>
    %c1 = arith.constant 1 : index
    %c0_37 = arith.constant 0 : index
    %c0_38 = arith.constant 0 : index
    %124 = vector.load %arg3[%c1, %c0_37, %c0_38] : memref<2x32x96xbf16, #tpu.memory_space<vmem>>, vector<1x32x96xbf16>
    %125 = vector.shape_cast %124 : vector<1x32x96xbf16> to vector<32x96xbf16>
    %cst_39 = arith.constant dense<0.000000e+00> : vector<16x96xf32>
    %126 = tpu.matmul %123, %125, %cst_39 {dimension_numbers = #tpu.dot_dimension_numbers<[1], [0], [0], [1], [0, 0, 1, 1], [], []>} : vector<16x32xbf16>, vector<32x96xbf16>, vector<16x96xf32> -> vector<16x96xf32>
    %c1_40 = arith.constant 1 : index
    %c0_41 = arith.constant 0 : index
    %c0_42 = arith.constant 0 : index
    %127 = vector.load %arg4[%c1_40, %c0_41, %c0_42] : memref<2x1x96xf32, #tpu.memory_space<vmem>>, vector<1x1x96xf32>
    %128 = vector.shape_cast %127 : vector<1x1x96xf32> to vector<1x96xf32>
    %129 = vector.broadcast %128 : vector<1x96xf32> to vector<16x96xf32>
    %130 = arith.addf %126, %129 : vector<16x96xf32>
    %131 = vector.extract_strided_slice %130 {offsets = [0, 0], sizes = [16, 8], strides = [1, 1]} : vector<16x96xf32> to vector<16x8xf32>
    %132 = vector.extract_strided_slice %130 {offsets = [0, 8], sizes = [16, 8], strides = [1, 1]} : vector<16x96xf32> to vector<16x8xf32>
    %133 = vector.extract_strided_slice %130 {offsets = [0, 16], sizes = [16, 8], strides = [1, 1]} : vector<16x96xf32> to vector<16x8xf32>
    %134 = vector.extract_strided_slice %130 {offsets = [0, 24], sizes = [16, 8], strides = [1, 1]} : vector<16x96xf32> to vector<16x8xf32>
    %135 = vector.extract_strided_slice %130 {offsets = [0, 32], sizes = [16, 8], strides = [1, 1]} : vector<16x96xf32> to vector<16x8xf32>
    %136 = vector.extract_strided_slice %130 {offsets = [0, 40], sizes = [16, 8], strides = [1, 1]} : vector<16x96xf32> to vector<16x8xf32>
    %137 = vector.extract_strided_slice %130 {offsets = [0, 48], sizes = [16, 8], strides = [1, 1]} : vector<16x96xf32> to vector<16x8xf32>
    %138 = vector.extract_strided_slice %130 {offsets = [0, 56], sizes = [16, 8], strides = [1, 1]} : vector<16x96xf32> to vector<16x8xf32>
    %139 = vector.extract_strided_slice %130 {offsets = [0, 64], sizes = [16, 8], strides = [1, 1]} : vector<16x96xf32> to vector<16x8xf32>
    %140 = vector.extract_strided_slice %130 {offsets = [0, 72], sizes = [16, 8], strides = [1, 1]} : vector<16x96xf32> to vector<16x8xf32>
    %141 = vector.extract_strided_slice %130 {offsets = [0, 80], sizes = [16, 8], strides = [1, 1]} : vector<16x96xf32> to vector<16x8xf32>
    %142 = vector.extract_strided_slice %130 {offsets = [0, 88], sizes = [16, 8], strides = [1, 1]} : vector<16x96xf32> to vector<16x8xf32>
    %143 = vector.shape_cast %131 : vector<16x8xf32> to vector<1x16x8xf32>
    %144 = vector.shape_cast %132 : vector<16x8xf32> to vector<1x16x8xf32>
    %145 = vector.shape_cast %133 : vector<16x8xf32> to vector<1x16x8xf32>
    %146 = vector.shape_cast %134 : vector<16x8xf32> to vector<1x16x8xf32>
    %147 = tpu.concatenate %143, %144, %145, %146 in 0 : vector<1x16x8xf32>, vector<1x16x8xf32>, vector<1x16x8xf32>, vector<1x16x8xf32> -> vector<4x16x8xf32>
    %148 = arith.truncf %147 : vector<4x16x8xf32> to vector<4x16x8xbf16>
    %149 = vector.shape_cast %135 : vector<16x8xf32> to vector<1x16x8xf32>
    %150 = vector.shape_cast %136 : vector<16x8xf32> to vector<1x16x8xf32>
    %151 = vector.shape_cast %137 : vector<16x8xf32> to vector<1x16x8xf32>
    %152 = vector.shape_cast %138 : vector<16x8xf32> to vector<1x16x8xf32>
    %153 = tpu.concatenate %149, %150, %151, %152 in 0 : vector<1x16x8xf32>, vector<1x16x8xf32>, vector<1x16x8xf32>, vector<1x16x8xf32> -> vector<4x16x8xf32>
    %154 = arith.truncf %153 : vector<4x16x8xf32> to vector<4x16x8xbf16>
    %155 = vector.shape_cast %139 : vector<16x8xf32> to vector<1x16x8xf32>
    %156 = vector.shape_cast %140 : vector<16x8xf32> to vector<1x16x8xf32>
    %157 = vector.shape_cast %141 : vector<16x8xf32> to vector<1x16x8xf32>
    %158 = vector.shape_cast %142 : vector<16x8xf32> to vector<1x16x8xf32>
    %159 = tpu.concatenate %155, %156, %157, %158 in 0 : vector<1x16x8xf32>, vector<1x16x8xf32>, vector<1x16x8xf32>, vector<1x16x8xf32> -> vector<4x16x8xf32>
    %160 = arith.truncf %159 : vector<4x16x8xf32> to vector<4x16x8xbf16>
    "tpu.trace_start"() <{level = 10 : i32, message = "nqd,nkd->nqk"}> : () -> ()
    %cst_43 = arith.constant dense<0.000000e+00> : vector<4x16x16xf32>
    %161 = tpu.matmul %148, %154, %cst_43 {dimension_numbers = #tpu.dot_dimension_numbers<[2], [2], [1], [1], [0, 0, 0, 1, 1, 1], [0], [0]>} : vector<4x16x8xbf16>, vector<4x16x8xbf16>, vector<4x16x16xf32> -> vector<4x16x16xf32>
    "tpu.trace_stop"() : () -> ()
    %cst_44 = arith.constant 0.353553385 : f32
    %162 = vector.broadcast %cst_44 : f32 to vector<4x16x16xf32>
    %163 = arith.mulf %161, %162 : vector<4x16x16xf32>
    %164 = vector.broadcast %23 : vector<1x16x16xf32> to vector<4x16x16xf32>
    %165 = arith.addf %163, %164 : vector<4x16x16xf32>
    %cst_45 = arith.constant dense<0xFF800000> : vector<4x16xf32>
    %166 = vector.multi_reduction <maximumf>, %165, %cst_45 [2] : vector<4x16x16xf32> to vector<4x16xf32>
    %167 = vector.shape_cast %166 : vector<4x16xf32> to vector<4x16x1xf32>
    %168 = vector.broadcast %167 : vector<4x16x1xf32> to vector<4x16x16xf32>
    %169 = arith.subf %165, %168 : vector<4x16x16xf32>
    %170 = math.exp %169 : vector<4x16x16xf32>
    %cst_46 = arith.constant dense<0.000000e+00> : vector<4x16xf32>
    %171 = vector.multi_reduction <add>, %170, %cst_46 [2] : vector<4x16x16xf32> to vector<4x16xf32>
    %172 = vector.shape_cast %171 : vector<4x16xf32> to vector<4x16x1xf32>
    %173 = tpu.reciprocal %172 {approx = true} : vector<4x16x1xf32> -> vector<4x16x1xf32>
    %174 = vector.broadcast %173 : vector<4x16x1xf32> to vector<4x16x16xf32>
    %175 = arith.mulf %170, %174 : vector<4x16x16xf32>
    %176 = arith.truncf %175 : vector<4x16x16xf32> to vector<4x16x16xbf16>
    "tpu.trace_start"() <{level = 10 : i32, message = "nqk,nkd->nqd"}> : () -> ()
    %cst_47 = arith.constant dense<0.000000e+00> : vector<4x16x8xf32>
    %177 = tpu.matmul %176, %160, %cst_47 {dimension_numbers = #tpu.dot_dimension_numbers<[2], [1], [1], [2], [0, 0, 0, 1, 1, 2], [0], [0]>} : vector<4x16x16xbf16>, vector<4x16x8xbf16>, vector<4x16x8xf32> -> vector<4x16x8xf32>
    "tpu.trace_stop"() : () -> ()
    %178 = vector.extract_strided_slice %177 {offsets = [0, 0, 0], sizes = [1, 16, 8], strides = [1, 1, 1]} : vector<4x16x8xf32> to vector<1x16x8xf32>
    %179 = vector.shape_cast %178 : vector<1x16x8xf32> to vector<16x8xf32>
    %180 = vector.extract_strided_slice %177 {offsets = [1, 0, 0], sizes = [1, 16, 8], strides = [1, 1, 1]} : vector<4x16x8xf32> to vector<1x16x8xf32>
    %181 = vector.shape_cast %180 : vector<1x16x8xf32> to vector<16x8xf32>
    %182 = vector.extract_strided_slice %177 {offsets = [2, 0, 0], sizes = [1, 16, 8], strides = [1, 1, 1]} : vector<4x16x8xf32> to vector<1x16x8xf32>
    %183 = vector.shape_cast %182 : vector<1x16x8xf32> to vector<16x8xf32>
    %184 = vector.extract_strided_slice %177 {offsets = [3, 0, 0], sizes = [1, 16, 8], strides = [1, 1, 1]} : vector<4x16x8xf32> to vector<1x16x8xf32>
    %185 = vector.shape_cast %184 : vector<1x16x8xf32> to vector<16x8xf32>
    %186 = tpu.concatenate %179, %181, %183, %185 in 1 : vector<16x8xf32>, vector<16x8xf32>, vector<16x8xf32>, vector<16x8xf32> -> vector<16x32xf32>
    %187 = arith.truncf %186 : vector<16x32xf32> to vector<16x32xbf16>
    %c1_48 = arith.constant 1 : index
    %c0_49 = arith.constant 0 : index
    %c0_50 = arith.constant 0 : index
    %188 = vector.load %arg5[%c1_48, %c0_49, %c0_50] : memref<2x32x32xbf16, #tpu.memory_space<vmem>>, vector<1x32x32xbf16>
    %189 = vector.shape_cast %188 : vector<1x32x32xbf16> to vector<32x32xbf16>
    %cst_51 = arith.constant dense<0.000000e+00> : vector<16x32xf32>
    %190 = tpu.matmul %187, %189, %cst_51 {dimension_numbers = #tpu.dot_dimension_numbers<[1], [0], [0], [1], [0, 0, 1, 1], [], []>} : vector<16x32xbf16>, vector<32x32xbf16>, vector<16x32xf32> -> vector<16x32xf32>
    %c1_52 = arith.constant 1 : index
    %c0_53 = arith.constant 0 : index
    %c0_54 = arith.constant 0 : index
    %191 = vector.load %arg6[%c1_52, %c0_53, %c0_54] : memref<2x1x32xf32, #tpu.memory_space<vmem>>, vector<1x1x32xf32>
    %192 = vector.shape_cast %191 : vector<1x1x32xf32> to vector<1x32xf32>
    %193 = vector.broadcast %192 : vector<1x32xf32> to vector<16x32xf32>
    %194 = arith.addf %190, %193 : vector<16x32xf32>
    %195 = arith.addf %122, %194 : vector<16x32xf32>
    %cst_55 = arith.constant dense<0.000000e+00> : vector<16xf32>
    %196 = vector.multi_reduction <add>, %195, %cst_55 [1] : vector<16x32xf32> to vector<16xf32>
    %197 = vector.shape_cast %196 : vector<16xf32> to vector<16x1xf32>
    %198 = arith.mulf %195, %195 : vector<16x32xf32>
    %cst_56 = arith.constant dense<0.000000e+00> : vector<16xf32>
    %199 = vector.multi_reduction <add>, %198, %cst_56 [1] : vector<16x32xf32> to vector<16xf32>
    %200 = vector.shape_cast %199 : vector<16xf32> to vector<16x1xf32>
    %cst_57 = arith.constant 3.125000e-02 : f32
    %201 = vector.broadcast %cst_57 : f32 to vector<16x1xf32>
    %202 = arith.mulf %197, %201 : vector<16x1xf32>
    %cst_58 = arith.constant 3.125000e-02 : f32
    %203 = vector.broadcast %cst_58 : f32 to vector<16x1xf32>
    %204 = arith.mulf %200, %203 : vector<16x1xf32>
    %205 = arith.mulf %202, %202 : vector<16x1xf32>
    %206 = arith.subf %204, %205 : vector<16x1xf32>
    %207 = vector.broadcast %202 : vector<16x1xf32> to vector<16x32xf32>
    %208 = arith.subf %195, %207 : vector<16x32xf32>
    %cst_59 = arith.constant 9.99999974E-6 : f32
    %209 = vector.broadcast %cst_59 : f32 to vector<16x1xf32>
    %210 = arith.addf %206, %209 : vector<16x1xf32>
    %211 = math.rsqrt %210 : vector<16x1xf32>
    %212 = vector.broadcast %211 : vector<16x1xf32> to vector<16x32xf32>
    %213 = arith.mulf %208, %212 : vector<16x32xf32>
    %c1_60 = arith.constant 1 : index
    %c0_61 = arith.constant 0 : index
    %c0_62 = arith.constant 0 : index
    %214 = vector.load %arg7[%c1_60, %c0_61, %c0_62] : memref<2x1x32xf32, #tpu.memory_space<vmem>>, vector<1x1x32xf32>
    %215 = vector.shape_cast %214 : vector<1x1x32xf32> to vector<1x32xf32>
    %216 = vector.broadcast %215 : vector<1x32xf32> to vector<16x32xf32>
    %217 = arith.mulf %213, %216 : vector<16x32xf32>
    %c1_63 = arith.constant 1 : index
    %c0_64 = arith.constant 0 : index
    %c0_65 = arith.constant 0 : index
    %218 = vector.load %arg8[%c1_63, %c0_64, %c0_65] : memref<2x1x32xf32, #tpu.memory_space<vmem>>, vector<1x1x32xf32>
    %219 = vector.shape_cast %218 : vector<1x1x32xf32> to vector<1x32xf32>
    %220 = vector.broadcast %219 : vector<1x32xf32> to vector<16x32xf32>
    %221 = arith.addf %217, %220 : vector<16x32xf32>
    %c0_66 = arith.constant 0 : index
    %c0_67 = arith.constant 0 : index
    %222 = vector.load %arg9[%c0_66, %c0_67] : memref<2x16xbf16, #tpu.memory_space<vmem>>, vector<2x16xbf16>
    %223 = arith.truncf %221 : vector<16x32xf32> to vector<16x32xbf16>
    %cst_68 = arith.constant dense<0.000000e+00> : vector<2x32xf32>
    %224 = tpu.matmul %222, %223, %cst_68 {dimension_numbers = #tpu.dot_dimension_numbers<[1], [0], [0], [1], [0, 0, 1, 1], [], []>} : vector<2x16xbf16>, vector<16x32xbf16>, vector<2x32xf32> -> vector<2x32xf32>
    %c0_69 = arith.constant 0 : index
    %c0_70 = arith.constant 0 : index
    %225 = vector.load %arg10[%c0_69, %c0_70] : memref<1x1xf32, #tpu.memory_space<vmem>>, vector<1x1xf32>
    %226 = vector.broadcast %225 : vector<1x1xf32> to vector<2x32xf32>
    %227 = arith.addf %224, %226 : vector<2x32xf32>
    %228 = arith.truncf %227 : vector<2x32xf32> to vector<2x32xbf16>
    %c0_71 = arith.constant 0 : index
    %c0_72 = arith.constant 0 : index
    %229 = vector.load %arg11[%c0_71, %c0_72] : memref<32x8xbf16, #tpu.memory_space<vmem>>, vector<32x8xbf16>
    %cst_73 = arith.constant dense<0.000000e+00> : vector<2x8xf32>
    %230 = tpu.matmul %228, %229, %cst_73 {dimension_numbers = #tpu.dot_dimension_numbers<[1], [0], [0], [1], [0, 0, 1, 1], [], []>} : vector<2x32xbf16>, vector<32x8xbf16>, vector<2x8xf32> -> vector<2x8xf32>
    %c0_74 = arith.constant 0 : index
    %c0_75 = arith.constant 0 : index
    %231 = vector.load %arg12[%c0_74, %c0_75] : memref<1x8xf32, #tpu.memory_space<vmem>>, vector<1x8xf32>
    %232 = vector.broadcast %231 : vector<1x8xf32> to vector<2x8xf32>
    %233 = arith.addf %230, %232 : vector<2x8xf32>
    %cst_76 = arith.constant 0.000000e+00 : f32
    %234 = vector.broadcast %cst_76 : f32 to vector<2x8xf32>
    %235 = arith.maximumf %233, %234 : vector<2x8xf32>
    %236 = arith.truncf %235 : vector<2x8xf32> to vector<2x8xbf16>
    %c0_77 = arith.constant 0 : index
    %c0_78 = arith.constant 0 : index
    %237 = vector.load %arg13[%c0_77, %c0_78] : memref<8x4xbf16, #tpu.memory_space<vmem>>, vector<8x4xbf16>
    %cst_79 = arith.constant dense<0.000000e+00> : vector<2x4xf32>
    %238 = tpu.matmul %236, %237, %cst_79 {dimension_numbers = #tpu.dot_dimension_numbers<[1], [0], [0], [1], [0, 0, 1, 1], [], []>} : vector<2x8xbf16>, vector<8x4xbf16>, vector<2x4xf32> -> vector<2x4xf32>
    %c0_80 = arith.constant 0 : index
    %c0_81 = arith.constant 0 : index
    %239 = vector.load %arg14[%c0_80, %c0_81] : memref<1x4xf32, #tpu.memory_space<vmem>>, vector<1x4xf32>
    %240 = vector.broadcast %239 : vector<1x4xf32> to vector<2x4xf32>
    %241 = arith.addf %238, %240 : vector<2x4xf32>
    %c0_82 = arith.constant 0 : index
    %c0_83 = arith.constant 0 : index
    %242 = vector.load %arg15[%c0_82, %c0_83] : memref<2x4xf32, #tpu.memory_space<vmem>>, vector<2x4xf32>
    tpu.vector_store %arg15[%c0_82, %c0_83], %241 {strides = array<i32>} : memref<2x4xf32, #tpu.memory_space<vmem>>, vector<2x4xf32>,
    return
  }
  func.func @transform_0(%arg0: i32) -> (i32, i32) {
    %c0_i32 = arith.constant 0 : i32
    %c0_i32_0 = arith.constant 0 : i32
    %c0_i32_1 = arith.constant 0 : i32
    return %c0_i32, %c0_i32_0 : i32, i32
  }
  func.func @transform_1(%arg0: i32) -> (i32, i32) {
    %c0_i32 = arith.constant 0 : i32
    %c0_i32_0 = arith.constant 0 : i32
    %c0_i32_1 = arith.constant 0 : i32
    return %c0_i32, %c0_i32_0 : i32, i32
  }
  func.func @transform_2(%arg0: i32) -> (i32, i32, i32) {
    %c0_i32 = arith.constant 0 : i32
    %c0_i32_0 = arith.constant 0 : i32
    %c0_i32_1 = arith.constant 0 : i32
    %c0_i32_2 = arith.constant 0 : i32
    return %c0_i32, %c0_i32_0, %c0_i32_1 : i32, i32, i32
  }
  func.func @transform_3(%arg0: i32) -> (i32, i32, i32) {
    %c0_i32 = arith.constant 0 : i32
    %c0_i32_0 = arith.constant 0 : i32
    %c0_i32_1 = arith.constant 0 : i32
    %c0_i32_2 = arith.constant 0 : i32
    return %c0_i32, %c0_i32_0, %c0_i32_1 : i32, i32, i32
  }
  func.func @transform_4(%arg0: i32) -> (i32, i32, i32) {
    %c0_i32 = arith.constant 0 : i32
    %c0_i32_0 = arith.constant 0 : i32
    %c0_i32_1 = arith.constant 0 : i32
    %c0_i32_2 = arith.constant 0 : i32
    return %c0_i32, %c0_i32_0, %c0_i32_1 : i32, i32, i32
  }
  func.func @transform_5(%arg0: i32) -> (i32, i32, i32) {
    %c0_i32 = arith.constant 0 : i32
    %c0_i32_0 = arith.constant 0 : i32
    %c0_i32_1 = arith.constant 0 : i32
    %c0_i32_2 = arith.constant 0 : i32
    return %c0_i32, %c0_i32_0, %c0_i32_1 : i32, i32, i32
  }
  func.func @transform_6(%arg0: i32) -> (i32, i32, i32) {
    %c0_i32 = arith.constant 0 : i32
    %c0_i32_0 = arith.constant 0 : i32
    %c0_i32_1 = arith.constant 0 : i32
    %c0_i32_2 = arith.constant 0 : i32
    return %c0_i32, %c0_i32_0, %c0_i32_1 : i32, i32, i32
  }
  func.func @transform_7(%arg0: i32) -> (i32, i32, i32) {
    %c0_i32 = arith.constant 0 : i32
    %c0_i32_0 = arith.constant 0 : i32
    %c0_i32_1 = arith.constant 0 : i32
    %c0_i32_2 = arith.constant 0 : i32
    return %c0_i32, %c0_i32_0, %c0_i32_1 : i32, i32, i32
  }
  func.func @transform_8(%arg0: i32) -> (i32, i32) {
    %c0_i32 = arith.constant 0 : i32
    %c0_i32_0 = arith.constant 0 : i32
    %c0_i32_1 = arith.constant 0 : i32
    return %c0_i32, %c0_i32_0 : i32, i32
  }
  func.func @transform_9(%arg0: i32) -> (i32, i32) {
    %c0_i32 = arith.constant 0 : i32
    %c0_i32_0 = arith.constant 0 : i32
    %c0_i32_1 = arith.constant 0 : i32
    return %c0_i32, %c0_i32_0 : i32, i32
  }
  func.func @transform_10(%arg0: i32) -> (i32, i32) {
    %c0_i32 = arith.constant 0 : i32
    %c0_i32_0 = arith.constant 0 : i32
    %c0_i32_1 = arith.constant 0 : i32
    return %c0_i32, %c0_i32_0 : i32, i32
  }
  func.func @transform_11(%arg0: i32) -> (i32, i32) {
    %c0_i32 = arith.constant 0 : i32
    %c0_i32_0 = arith.constant 0 : i32
    %c0_i32_1 = arith.constant 0 : i32
    return %c0_i32, %c0_i32_0 : i32, i32
  }
  func.func @transform_12(%arg0: i32) -> (i32, i32) {
    %c0_i32 = arith.constant 0 : i32
    %c0_i32_0 = arith.constant 0 : i32
    %c0_i32_1 = arith.constant 0 : i32
    return %c0_i32, %c0_i32_0 : i32, i32
  }
  func.func @transform_13(%arg0: i32) -> (i32, i32) {
    %c0_i32 = arith.constant 0 : i32
    %c0_i32_0 = arith.constant 0 : i32
    %c0_i32_1 = arith.constant 0 : i32
    return %c0_i32, %c0_i32_0 : i32, i32
  }
  func.func @transform_14(%arg0: i32) -> (i32, i32) {
    %c0_i32 = arith.constant 0 : i32
    %c0_i32_0 = arith.constant 0 : i32
    %c0_i32_1 = arith.constant 0 : i32
    return %c0_i32, %c0_i32_0 : i32, i32
  }
}

</mosaic_0001>

<bundles_post_ra>
// kernel: tpu_custom_call.1
= control target key start
LH: loop header
LB: loop body
LE: loop exit
PB: predicated region body
PF: predicated region fallthrough
CT: control target
= control target key end

     0   :  { %s2032_s0 = inlined_call_operand.vmem [shape: s32[16,1], index: 0, kind: input, shape index: {}]   ;;  %s2033_s1 = inlined_call_operand.vmem [shape: bf16[128,32], index: 1, kind: input, shape index: {}]   ;;  %s2034_s2 = inlined_call_operand.vmem [shape: bf16[2,32,96], index: 2, kind: input, shape index: {}]   ;;  %s2035_s3 = inlined_call_operand.vmem [shape: f32[2,1,96], index: 3, kind: input, shape index: {}]   ;;  %s2036_s4 = inlined_call_operand.vmem [shape: bf16[2,32,32], index: 4, kind: input, shape index: {}]   ;;  %s2037_s5 = inlined_call_operand.vmem [shape: f32[2,1,32], index: 5, kind: input, shape index: {}]   ;;  %s2038_s6 = inlined_call_operand.vmem [shape: f32[2,1,32], index: 6, kind: input, shape index: {}]   ;;  %s2039_s7 = inlined_call_operand.vmem [shape: f32[2,1,32], index: 7, kind: input, shape index: {}]   ;;  %s2040_s8 = inlined_call_operand.vmem [shape: bf16[2,16], index: 8, kind: input, shape index: {}]   ;;  %s2041_s9 = inlined_call_operand.<no memory space> [shape: f32[1,1], index: 9, kind: input, shape index: {}]   ;;  %s2042_s10 = inlined_call_operand.vmem [shape: bf16[32,8], index: 10, kind: input, shape index: {}]   ;;  %s2043_s11 = inlined_call_operand.vmem [shape: f32[1,8], index: 11, kind: input, shape index: {}]   ;;  %s2044_s12 = inlined_call_operand.vmem [shape: bf16[8,4], index: 12, kind: input, shape index: {}]   ;;  %s2045_s13 = inlined_call_operand.vmem [shape: f32[1,4], index: 13, kind: input, shape index: {}]   ;;  %s2046_s14 = inlined_call_operand.hbm [shape: f32[2,4], index: 14, kind: output, shape index: {}]  }
   0x1   :  { %v19_v0 = vstv %s2041_s9 }
   0x2   :  { %20 = vst [vmem:[#allocation2] sm:$0x1] %v19_v0 }
   0x3   :  { %v51_v1 = vld [vmem:[%s2032_s0] sm:$0xff]  ;;  %v1436_v2 = vld [vmem:[%s2033_s1 + $0x38] sm:$0xff]  ;;  %v1632_v3 = vmov 0   ;;  %v1435_v4 = vld [vmem:[%s2033_s1 + $0x30] sm:$0xff] }
   0x4   :  { %1460 = vset.pattern.permute.xlu0 %v1632_v3  ;;  %132 = vmatpush.bf16.msra.mxu0 %v1436_v2  ;;  %v1434_v5 = vld [vmem:[%s2033_s1 + $0x28] sm:$0xff] }
   0x5   :  { %56 = vperm.xlu0 %1460, %v51_v1  }
   0x8   :  { %133 = vmatpush.bf16.msra.mxu0 %v1435_v4 }
   0x9   :  { %21 = vsyncpa [#allocation4], 0  ;;  %v52_v6 = vld [vmem:[%s2032_s0 + $0x8] sm:$0xff]  ;;  %v1433_v7 = vld [vmem:[%s2033_s1 + $0x20] sm:$0xff]  ;;  %v53_v13 = vlaneseq  ;;  %v1633_v16 = vmov 1.0|1.0  }
   0xa   :  { %v1432_v8 = vld [vmem:[%s2033_s1 + $0x18] sm:$0xff]  ;;  %v1431_v9 = vld [vmem:[%s2033_s1 + $0x10] sm:$0xff]  ;;  %v1430_v10 = vld [vmem:[%s2033_s1 + $0x8] sm:$0xff]  ;;  %vm190_vm3 = vcmask 261120   ;;  %s1634_s22 = smov 112   ;;  %s1635_s9 = smov 104  }
   0xb   :  { %v1429_v11 = vld [vmem:[%s2033_s1] sm:$0xff]  ;;  %v1754_v14 = vand.u32 127, %v53_v13  ;;  %v1438_v17 = vld [vmem:[%s2034_s2 + $0x8] sm:$0xff]  ;;  %s1636_s23 = smov 120   ;;  %s1637_s24 = smov 96   ;;  %vm243_vm4 = vcmask 64512  }
   0xc   :  { %134 = vmatpush.bf16.msra.mxu0 %v1434_v5  ;;  %200 = vmatpush.bf16.msra.mxu1 %v1438_v17  ;;  %v1437_v18 = vld [vmem:[%s2034_s2] sm:$0xff]  ;;  %v1638_v61 = vmov 8.0   ;;  %v147_v2 = vshrl.u32 %v53_v13, 7  ;;  %v1639_v17 = vmov -1e+30   ;;  %vm361_vm7 = vcmask 130048  }
   0xd   :  { %59 = vperm.xlu0 %1460, %v52_v6   ;;  %v1521_v23 = vld [vmem:[%s2035_s3] ss:$0 sm:$0xff]  ;;  %1532 = vrcp.f32 %v1638_v61  ;;  %v151_v5 = vcvt.s32.f32 %v1754_v14  ;;  %s1640_s25 = smov 64   ;;  %s1641_s26 = smov 16   ;;  %vm586_vm9 = vcmask 195584  }
   0xe   :  { %v149_v4 = vcvt.s32.f32 %v147_v2  ;;  %s1642_s27 = smov 8   ;;  %s1643_s28 = smov 24  }
   0xf   :  { %s1644_s21 = smov [#allocation3]   ;;  %s1309_s15 = sshll.u32 %s2046_s14, 4  ;;  %s1310_s15 = int_to_ptr.hbm [resolvable:$true] %s1309_s15 }
  0x10   :  { %135 = vmatpush.bf16.msra.mxu0 %v1433_v7  ;;  %201 = vmatpush.bf16.msra.mxu1 %v1437_v18  ;;  %v148_v7 = vadd.s32 8, %v147_v2 }
  0x13   :  { %v1533_v62 = vpop.eup %1532 }
  0x14   :  { %136 = vmatpush.bf16.msra.mxu0 %v1432_v8  ;;  %v153_v63 = vmul.f32 8.0, %v1533_v62  ;;  %vm157_vm5 = vweird.f32 %v1533_v62 }
  0x16   :  { %v154_v0 = vsub.f32 1.0, %v153_v63 }
  0x18   :  { %137 = vmatpush.bf16.msra.mxu0 %v1431_v9  ;;  %v155_v1 = vmul.f32 %v1533_v62, %v154_v0 }
  0x1a   :  { %v156_v3 = vadd.f32 %v1533_v62, %v155_v1 }
  0x1c   :  { %138 = vmatpush.bf16.msra.mxu0 %v1430_v10  ;;  %v158_v6 = vsel %vm157_vm5, %v1533_v62, %v156_v3  ;;  %v150_v10 = vcvt.s32.f32 %v148_v7 }
  0x1d   :  { %v159_v8 = vmul.f32 %v158_v6, %v149_v4  ;;  %v163_v9 = vmul.f32 %v158_v6, %v151_v5 }
  0x20   :  { %139 = vmatpush.bf16.msra.mxu0 %v1429_v11  ;;  %v161_v11 = vfloor.f32 %v159_v8 }
  0x77   :  { %v57_v12 = vpop.permute.xlu0 %56 }
  0x78   :  { %vm61_vm0 = vcmp.eq.s32.totalorder %v1754_v14, %v57_v12  ;;  %v164_v12 = vfloor.f32 %v163_v9 }
  0x7a   :  { %vm165_vm6 = vcmp.eq.f32.partialorder %v161_v11, %v164_v12 }
  0x7b   :  { %v1801_v18 = vsel %vm165_vm6, 0.0, %v1639_v17 }
  0x7f   :  { %v60_v15 = vpop.permute.xlu0 %59 }
  0x80   :  { %vm62_vm1 = vcmp.eq.s32.totalorder %v1754_v14, %v60_v15  ;;  %v160_v15 = vmul.f32 %v158_v6, %v150_v10 }
  0x81   :  { %vm1352_vm2 = vmpackc.low %vm62_vm1, %vm61_vm0 }
  0x82   :  { %1353 = vmatmul.msk.bf16.vlgmr.msra.gmra.mxu0 %vm1352_vm2, %v1633_v16 }
  0xff   :  { %v1764_v19 = vpop.f32.mrf.mxu0 }
 0x107   :  { %v1766_v20 = vpop.f32.mrf.mxu0 }
 0x108   :  { %v169_v21 = vpack.c.bf16 %v1766_v20, %v1764_v19 }
 0x10a   :  { %1362 = vmatmul.msk.bf16.vlgmr.msra.gmra.mxu1 %vm190_vm3, %v169_v21 }
 0x187   :  { %v203_v22 = vpop.f32.mrf.mxu1 }
 0x188   :  { %v204_v25 = vadd.f32 %v1521_v23, %v203_v22  ;;  %v162_v22 = vfloor.f32 %v160_v15 }
 0x18a   :  { %v228_v29 = vpack.c.bf16 %v204_v25, %v204_v25  ;;  %vm166_vm8 = vcmp.eq.f32.partialorder %v162_v22, %v164_v12 }
 0x18c   :  { %v238_v31 = vunpack.c.l.b16 %v228_v29 }
 0x18f   :  { %v205_v24 = vpop.f32.mrf.mxu1 }
 0x190   :  { %v206_v26 = vadd.f32 %v1521_v23, %v205_v24 }
 0x192   :  { %v1471_v27 = vpack.i.bf16 %v206_v26, %v204_v25  ;;  %v229_v28 = vpack.c.bf16 %v206_v26, %v206_v26  ;;  %v1806_v26 = vsel %vm166_vm8, 0.0, %v1639_v17 }
 0x194   :  { %1472 = vrot.lane.b32.xlu2 %v1471_v27, %s1634_s22  ;;  %1462 = vrot.lane.b32.xlu1 %v1471_v27, %s1635_s9  ;;  %v239_v30 = vunpack.c.l.b16 %v229_v28 }
 0x196   :  { %v1776_v32 = vpack.c.b16 %v239_v30, %v238_v31 }
 0x19c   :  { %1467 = vrot.lane.b32.xlu1 %v1471_v27, %s1636_s23  ;;  %241 = vrot.lane.b32.xlu2 %v1776_v32, %s1637_s24 }
 0x1ee   :  { %v1473_v33 = vpop.permute.xlu2 %1472 }
 0x1ef   :  { %v1475_v34 = vunpack.i.h.bf16 %v1473_v33  ;;  %v1474_v35 = vunpack.i.l.bf16 %v1473_v33 }
 0x1f1   :  { %v233_v36 = vpack.c.bf16 %v1475_v34, %v1475_v34  ;;  %v232_v37 = vpack.c.bf16 %v1474_v35, %v1474_v35 }
 0x1f3   :  { %v294_v38 = vunpack.c.l.b16 %v233_v36  ;;  %v293_v39 = vunpack.c.l.b16 %v232_v37 }
 0x1f5   :  { %v1781_v40 = vpack.c.b16 %v294_v38, %v293_v39 }
 0x1f6   :  { %v242_v41 = vpop.permute.xlu2 %241 }
 0x1f7   :  { %296 = vrot.lane.b32.xlu2 %v1781_v40, %s1637_s24  ;;  %v248_v42 = vsel %vm243_vm4, %v242_v41, 0 }
 0x1f8   :  { %257 = vmatpush.bf16.xpose.msra.mxu2 %v248_v42 }
 0x1ff   :  { %1363 = vmatmul.msk.bf16.vlgmr.msra.gmra.mxu2 %vm243_vm4, %v1776_v32 }
 0x206   :  { %v1463_v43 = vpop.permute.xlu1 %1462 }
 0x207   :  { %v1465_v44 = vunpack.i.h.bf16 %v1463_v43  ;;  %v1464_v45 = vunpack.i.l.bf16 %v1463_v43 }
 0x209   :  { %v235_v46 = vpack.c.bf16 %v1465_v44, %v1465_v44  ;;  %v234_v47 = vpack.c.bf16 %v1464_v45, %v1464_v45 }
 0x20b   :  { %v321_v48 = vunpack.c.l.b16 %v235_v46  ;;  %v320_v49 = vunpack.c.l.b16 %v234_v47 }
 0x20d   :  { %v1788_v50 = vpack.c.b16 %v321_v48, %v320_v49 }
 0x20e   :  { %v1468_v51 = vpop.permute.xlu1 %1467 }
 0x20f   :  { %v1470_v52 = vunpack.i.h.bf16 %v1468_v51  ;;  %v1469_v53 = vunpack.i.l.bf16 %v1468_v51  ;;  %323 = vrot.lane.b32.xlu0 %v1788_v50, %s1637_s24 }
 0x211   :  { %v231_v54 = vpack.c.bf16 %v1470_v52, %v1470_v52  ;;  %v230_v55 = vpack.c.bf16 %v1469_v53, %v1469_v53 }
 0x213   :  { %v267_v56 = vunpack.c.l.b16 %v231_v54  ;;  %v266_v57 = vunpack.c.l.b16 %v230_v55 }
 0x215   :  { %v1792_v58 = vpack.c.b16 %v267_v56, %v266_v57 }
 0x217   :  { %269 = vrot.lane.b32.xlu1 %v1792_v58, %s1637_s24 }
 0x251   :  { %v297_v59 = vpop.permute.xlu2 %296 }
 0x252   :  { %v302_v60 = vsel %vm243_vm4, %v297_v59, 0 }
 0x253   :  { %311 = vmatpush.bf16.xpose.msrb.mxu1 %v302_v60 }
 0x25a   :  { %1365 = vmatmul.msk.bf16.vlgmr.msrb.gmra.mxu1 %vm243_vm4, %v1781_v40 }
 0x281   :  { %v324_v16 = vpop.permute.xlu0 %323 }
 0x282   :  { %v259_v21 = vpop.f32.mrf.mxu2  ;;  %v329_v13 = vsel %vm243_vm4, %v324_v16, 0 }
 0x283   :  { %v345_v23 = vmul.f32 0.35355338, %v259_v21  ;;  %338 = vmatpush.bf16.xpose.msrb.mxu2 %v329_v13 }
 0x285   :  { %v353_v14 = vadd.f32 %v345_v23, %v1801_v18 }
 0x287   :  { %v362_v24 = vsel %vm361_vm7, %v353_v14, -inf }
 0x288   :  { %363 = vmax.xlane.f32.xlu0 %v362_v24 }
 0x289   :  { %v270_v25 = vpop.permute.xlu1 %269 }
 0x28a   :  { %v261_v27 = vpop.f32.mrf.mxu2  ;;  %1366 = vmatmul.msk.bf16.vlgmr.msrb.gmra.mxu2 %vm243_vm4, %v1788_v50  ;;  %v275_v28 = vsel %vm243_vm4, %v270_v25, 0 }
 0x28b   :  { %v346_v29 = vmul.f32 0.35355338, %v261_v27  ;;  %284 = vmatpush.bf16.xpose.msra.mxu3 %v275_v28 }
 0x28d   :  { %v354_v30 = vadd.f32 %v346_v29, %v1806_v26 }
 0x28f   :  { %v365_v31 = vsel %vm361_vm7, %v354_v30, -inf }
 0x290   :  { %366 = vmax.xlane.f32.xlu1 %v365_v31 }
 0x292   :  { %1364 = vmatmul.msk.bf16.vlgmr.msra.gmra.mxu3 %vm243_vm4, %v1792_v58 }
 0x2d7   :  { %v313_v33 = vpop.f32.mrf.mxu1 }
 0x2d8   :  { %v349_v34 = vmul.f32 0.35355338, %v313_v33 }
 0x2da   :  { %v357_v35 = vadd.f32 %v349_v34, %v1801_v18 }
 0x2dc   :  { %v374_v36 = vsel %vm361_vm7, %v357_v35, -inf }
 0x2dd   :  { %375 = vmax.xlane.f32.xlu2 %v374_v36 }
 0x2df   :  { %v315_v51 = vpop.f32.mrf.mxu1 }
 0x2e0   :  { %v350_v57 = vmul.f32 0.35355338, %v315_v51 }
 0x2e2   :  { %v358_v63 = vadd.f32 %v350_v57, %v1806_v26 }
 0x2e4   :  { %v377_v3 = vsel %vm361_vm7, %v358_v63, -inf }
 0x2fb   :  { %v364_v38 = vpop.xlane.xlu0 %363 }
 0x2fc   :  { %v386_v42 = vsub.f32 %v353_v14, %v364_v38 }
 0x2fe   :  { %v394_v44 = vmul.f32 1.442695, %v386_v42 }
 0x300   :  { %1534 = vpow2.f32 %v394_v44 }
 0x303   :  { %v367_v49 = vpop.xlane.xlu1 %366 }
 0x304   :  { %v387_v54 = vsub.f32 %v354_v30, %v367_v49 }
 0x306   :  { %v396_v60 = vmul.f32 1.442695, %v387_v54  ;;  %v1535_v62 = vpop.eup %1534 }
 0x307   :  { %v410_v2 = vsel %vm361_vm7, %v1535_v62, 0.0 }
 0x308   :  { %1536 = vpow2.f32 %v396_v60 }
 0x30d   :  { %v340_v37 = vpop.f32.mrf.mxu2 }
 0x30e   :  { %v351_v39 = vmul.f32 0.35355338, %v340_v37  ;;  %v1537_v4 = vpop.eup %1536 }
 0x30f   :  { %v413_v5 = vsel %vm361_vm7, %v1537_v4, 0.0 }
 0x310   :  { %v359_v41 = vadd.f32 %v351_v39, %v1801_v18 }
 0x312   :  { %v380_v43 = vsel %vm361_vm7, %v359_v41, -inf }
 0x313   :  { %381 = vmax.xlane.f32.xlu0 %v380_v43 }
 0x315   :  { %v286_v45 = vpop.f32.mrf.mxu3  ;;  %v342_v46 = vpop.f32.mrf.mxu2 }
 0x316   :  { %v347_v47 = vmul.f32 0.35355338, %v286_v45  ;;  %v352_v48 = vmul.f32 0.35355338, %v342_v46 }
 0x318   :  { %v360_v52 = vadd.f32 %v352_v48, %v1806_v26  ;;  %v355_v53 = vadd.f32 %v347_v47, %v1801_v18 }
 0x31a   :  { %v383_v55 = vsel %vm361_vm7, %v360_v52, -inf  ;;  %v368_v56 = vsel %vm361_vm7, %v355_v53, -inf }
 0x31b   :  { %384 = vmax.xlane.f32.xlu1 %v383_v55  ;;  %369 = vmax.xlane.f32.xlu2 %v368_v56 }
 0x31d   :  { %v288_v59 = vpop.f32.mrf.mxu3 }
 0x31e   :  { %v348_v61 = vmul.f32 0.35355338, %v288_v59 }
 0x320   :  { %v356_v0 = vadd.f32 %v348_v61, %v1806_v26 }
 0x322   :  { %v371_v1 = vsel %vm361_vm7, %v356_v0, -inf }
 0x323   :  { %372 = vmax.xlane.f32.xlu0 %v371_v1  ;;  %411 = vadd.xlane.f32.xlu1 %v410_v2 }
 0x324   :  { %378 = vmax.xlane.f32.xlu2 %v377_v3 }
 0x32c   :  { %414 = vadd.xlane.f32.xlu2 %v413_v5 }
 0x337   :  { %463 = vrot.lane.b32.xlu0 %v1776_v32, %s1640_s25 }
 0x350   :  { %v376_v6 = vpop.xlane.xlu2 %375 }
 0x351   :  { %v390_v7 = vsub.f32 %v357_v35, %v376_v6 }
 0x353   :  { %v402_v8 = vmul.f32 1.442695, %v390_v7 }
 0x355   :  { %1538 = vpow2.f32 %v402_v8 }
 0x35b   :  { %v1831_v9 = vpop.eup %1538 }
 0x35c   :  { %v422_v10 = vsel %vm361_vm7, %v1831_v9, 0.0 }
 0x35d   :  { %423 = vadd.xlane.f32.xlu1 %v422_v10 }
 0x386   :  { %v382_v11 = vpop.xlane.xlu0 %381 }
 0x387   :  { %v392_v12 = vsub.f32 %v359_v41, %v382_v11 }
 0x389   :  { %v406_v15 = vmul.f32 1.442695, %v392_v12 }
 0x38b   :  { %1540 = vpow2.f32 %v406_v15 }
 0x38e   :  { %v385_v16 = vpop.xlane.xlu1 %384  ;;  %v370_v17 = vpop.xlane.xlu2 %369 }
 0x38f   :  { %v388_v21 = vsub.f32 %v355_v53, %v370_v17  ;;  %v393_v30 = vsub.f32 %v360_v52, %v385_v16 }
 0x391   :  { %v1835_v13 = vpop.eup %1540  ;;  %v398_v32 = vmul.f32 1.442695, %v388_v21  ;;  %v408_v34 = vmul.f32 1.442695, %v393_v30 }
 0x392   :  { %v428_v22 = vsel %vm361_vm7, %v1835_v13, 0.0 }
 0x393   :  { %429 = vadd.xlane.f32.xlu1 %v428_v22  ;;  %1542 = vpow2.f32 %v398_v32 }
 0x396   :  { %v373_v23 = vpop.xlane.xlu0 %372  ;;  %v412_v24 = vpop.xlane.xlu1 %411 }
 0x397   :  { %v389_v14 = vsub.f32 %v356_v0, %v373_v23  ;;  %v379_v25 = vpop.xlane.xlu2 %378  ;;  %1544 = vrcp.f32 %v412_v24 }
 0x398   :  { %v391_v27 = vsub.f32 %v358_v63, %v379_v25 }
 0x399   :  { %v400_v28 = vmul.f32 1.442695, %v389_v14  ;;  %v1839_v29 = vpop.eup %1542 }
 0x39a   :  { %v404_v31 = vmul.f32 1.442695, %v391_v27  ;;  %v416_v33 = vsel %vm361_vm7, %v1839_v29, 0.0 }
 0x39b   :  { %1546 = vpow2.f32 %v400_v28  ;;  %417 = vadd.xlane.f32.xlu1 %v416_v33 }
 0x39c   :  { %1548 = vpow2.f32 %v404_v31 }
 0x39d   :  { %v1545_v36 = vpop.eup %1544 }
 0x39e   :  { %v442_v41 = vmul.f32 %v1545_v36, %v1535_v62 }
 0x39f   :  { %v415_v35 = vpop.xlane.xlu2 %414 }
 0x3a0   :  { %1550 = vrcp.f32 %v415_v35  ;;  %v450_v44 = vpack.c.bf16 %v442_v41, %v442_v41  ;;  %v1439_v41 = vld [vmem:[%s2036_s4] sm:$0xff] }
 0x3a1   :  { %v1547_v37 = vpop.eup %1546  ;;  %1552 = vpow2.f32 %v408_v34 }
 0x3a2   :  { %v1549_v38 = vpop.eup %1548  ;;  %v419_v39 = vsel %vm361_vm7, %v1547_v37, 0.0  ;;  %v460_v49 = vunpack.c.l.b16 %v450_v44 }
 0x3a3   :  { %420 = vadd.xlane.f32.xlu0 %v419_v39  ;;  %v425_v42 = vsel %vm361_vm7, %v1549_v38, 0.0  ;;  %v1440_v39 = vld [vmem:[%s2036_s4 + $0x8] sm:$0xff] }
 0x3a4   :  { %426 = vadd.xlane.f32.xlu2 %v425_v42  ;;  %619 = vmatpush.bf16.msrb.mxu0 %v1440_v39 }
 0x3a6   :  { %v1551_v43 = vpop.eup %1550 }
 0x3a7   :  { %v443_v45 = vmul.f32 %v1551_v43, %v1537_v4  ;;  %v1553_v46 = vpop.eup %1552 }
 0x3a8   :  { %v431_v52 = vsel %vm361_vm7, %v1553_v46, 0.0  ;;  %620 = vmatpush.bf16.msrb.mxu0 %v1439_v41 }
 0x3a9   :  { %v451_v47 = vpack.c.bf16 %v443_v45, %v443_v45  ;;  %v464_v48 = vpop.permute.xlu0 %463 }
 0x3aa   :  { %476 = vmatpush.bf16.msrb.mxu3 %v464_v48 }
 0x3ab   :  { %v461_v51 = vunpack.c.l.b16 %v451_v47 }
 0x3ac   :  { %432 = vadd.xlane.f32.xlu2 %v431_v52 }
 0x3ad   :  { %v462_v53 = vpack.c.b16 %v461_v51, %v460_v49 }
 0x3af   :  { %1367 = vmatmul.msk.bf16.vlgmr.msrb.gmra.mxu3 %vm361_vm7, %v462_v53 }
 0x3b4   :  { %538 = vrot.lane.b32.xlu1 %v1788_v50, %s1640_s25 }
 0x3c4   :  { %513 = vrot.lane.b32.xlu2 %v1781_v40, %s1640_s25 }
 0x3cc   :  { %488 = vrot.lane.b32.xlu2 %v1792_v58, %s1640_s25 }
 0x3d0   :  { %v424_v54 = vpop.xlane.xlu1 %423 }
 0x3d1   :  { %1554 = vrcp.f32 %v424_v54 }
 0x3d7   :  { %v1555_v60 = vpop.eup %1554 }
 0x3d8   :  { %v446_v50 = vmul.f32 %v1555_v60, %v1831_v9  ;;  %v1522_v60 = vld [vmem:[%s2037_s5] ss:$0 sm:$0xff] }
 0x3da   :  { %v454_v1 = vpack.c.bf16 %v446_v50, %v446_v50 }
 0x3dc   :  { %v510_v7 = vunpack.c.l.b16 %v454_v1 }
 0x406   :  { %v430_v55 = vpop.xlane.xlu1 %429 }
 0x40e   :  { %v418_v59 = vpop.xlane.xlu1 %417 }
 0x416   :  { %v421_v57 = vpop.xlane.xlu0 %420 }
 0x417   :  { %v427_v56 = vpop.xlane.xlu2 %426 }
 0x418   :  { %1556 = vrcp.f32 %v427_v56 }
 0x419   :  { %1558 = vrcp.f32 %v430_v55 }
 0x41a   :  { %1560 = vrcp.f32 %v421_v57 }
 0x41b   :  { %1562 = vrcp.f32 %v418_v59 }
 0x41e   :  { %v1557_v61 = vpop.eup %1556 }
 0x41f   :  { %v447_v62 = vmul.f32 %v1557_v61, %v1549_v38  ;;  %v433_v63 = vpop.xlane.xlu2 %432  ;;  %v1559_v40 = vpop.eup %1558 }
 0x420   :  { %1564 = vrcp.f32 %v433_v63  ;;  %v1561_v58 = vpop.eup %1560  ;;  %v448_v2 = vmul.f32 %v1559_v40, %v1835_v13 }
 0x421   :  { %v455_v0 = vpack.c.bf16 %v447_v62, %v447_v62  ;;  %v1563_v3 = vpop.eup %1562  ;;  %v445_v4 = vmul.f32 %v1561_v58, %v1547_v37 }
 0x422   :  { %v456_v8 = vpack.c.bf16 %v448_v2, %v448_v2  ;;  %v444_v10 = vmul.f32 %v1563_v3, %v1839_v29 }
 0x423   :  { %v511_v5 = vunpack.c.l.b16 %v455_v0  ;;  %v453_v15 = vpack.c.bf16 %v445_v4, %v445_v4 }
 0x424   :  { %v535_v21 = vunpack.c.l.b16 %v456_v8  ;;  %v452_v32 = vpack.c.bf16 %v444_v10, %v444_v10  ;;  %v1442_v8 = vld [vmem:[%s2034_s2 + $0x18] sm:$0xff] }
 0x425   :  { %v512_v16 = vpack.c.b16 %v511_v5, %v510_v7  ;;  %v486_v13 = vunpack.c.l.b16 %v453_v15 }
 0x426   :  { %v1565_v6 = vpop.eup %1564  ;;  %v539_v12 = vpop.permute.xlu1 %538  ;;  %v485_v14 = vunpack.c.l.b16 %v452_v32 }
 0x427   :  { %v449_v11 = vmul.f32 %v1565_v6, %v1553_v46  ;;  %v514_v9 = vpop.permute.xlu2 %513  ;;  %551 = vmatpush.bf16.msra.mxu3 %v539_v12 }
 0x428   :  { %526 = vmatpush.bf16.msra.mxu2 %v514_v9  ;;  %v487_v25 = vpack.c.b16 %v486_v13, %v485_v14 }
 0x429   :  { %v457_v17 = vpack.c.bf16 %v449_v11, %v449_v11 }
 0x42b   :  { %v536_v22 = vunpack.c.l.b16 %v457_v17  ;;  %1369 = vmatmul.msk.bf16.vlgmr.msra.gmra.mxu2 %vm361_vm7, %v512_v16 }
 0x42d   :  { %v537_v23 = vpack.c.b16 %v536_v22, %v535_v21 }
 0x42f   :  { %1370 = vmatmul.msk.bf16.vlgmr.msra.gmra.mxu3 %vm361_vm7, %v537_v23  ;;  %v489_v24 = vpop.permute.xlu2 %488 }
 0x430   :  { %501 = vmatpush.bf16.msra.mxu1 %v489_v24 }
 0x432   :  { %v478_v27 = vpop.f32.mrf.mxu3 }
 0x433   :  { %1368 = vmatmul.msk.bf16.vlgmr.msra.gmra.mxu1 %vm361_vm7, %v487_v25 }
 0x434   :  { %721 = vmatpush.bf16.msrb.mxu1 %v1442_v8 }
 0x43a   :  { %v480_v28 = vpop.f32.mrf.mxu3 }
 0x4ae   :  { %v528_v29 = vpop.f32.mrf.mxu2 }
 0x4b0   :  { %v503_v30 = vpop.f32.mrf.mxu1 }
 0x4b2   :  { %v553_v31 = vpop.f32.mrf.mxu3 }
 0x4b6   :  { %v530_v33 = vpop.f32.mrf.mxu2 }
 0x4b7   :  { %v1481_v34 = vpack.i.bf16 %v530_v33, %v528_v29 }
 0x4b8   :  { %v505_v35 = vpop.f32.mrf.mxu1 }
 0x4b9   :  { %v1476_v36 = vpack.i.bf16 %v505_v35, %v503_v30  ;;  %1482 = vrot.lane.b32.xlu2 %v1481_v34, %s1641_s26 }
 0x4ba   :  { %v555_v37 = vpop.f32.mrf.mxu3 }
 0x4bb   :  { %1477 = vrot.lane.b32.xlu1 %v1476_v36, %s1642_s27  ;;  %v1486_v38 = vpack.i.bf16 %v555_v37, %v553_v31  ;;  %v1523_v37 = vld [vmem:[%s2038_s6] ss:$0 sm:$0xff] }
 0x4c3   :  { %1487 = vrot.lane.b32.xlu1 %v1486_v38, %s1643_s28 }
 0x513   :  { %v1483_v45 = vpop.permute.xlu2 %1482 }
 0x514   :  { %v1485_v48 = vunpack.i.h.bf16 %v1483_v45  ;;  %v1484_v49 = vunpack.i.l.bf16 %v1483_v45  ;;  %v1524_v45 = vld [vmem:[%s2039_s7] ss:$0 sm:$0xff] }
 0x52d   :  { %v1478_v42 = vpop.permute.xlu1 %1477 }
 0x52e   :  { %v1480_v43 = vunpack.i.h.bf16 %v1478_v42  ;;  %v1479_v44 = vunpack.i.l.bf16 %v1478_v42 }
 0x530   :  { %v583_v46 = vsel %vm243_vm4, %v480_v28, %v1480_v43  ;;  %v582_v47 = vsel %vm243_vm4, %v478_v27, %v1479_v44 }
 0x531   :  { %v584_v54 = vsel %vm361_vm7, %v582_v47, %v1484_v49  ;;  %v585_v55 = vsel %vm361_vm7, %v583_v46, %v1485_v48 }
 0x535   :  { %v1488_v51 = vpop.permute.xlu1 %1487 }
 0x536   :  { %v1490_v52 = vunpack.i.h.bf16 %v1488_v51  ;;  %v1489_v53 = vunpack.i.l.bf16 %v1488_v51 }
 0x538   :  { %v587_v56 = vsel %vm586_vm9, %v584_v54, %v1489_v53  ;;  %v588_v57 = vsel %vm586_vm9, %v585_v55, %v1490_v52  ;;  %v1525_v52 = vld [vmem:[%s2035_s3 + $0x1] ss:$0 sm:$0xff] }
 0x539   :  { %v589_v59 = vpack.c.bf16 %v588_v57, %v587_v56 }
 0x53b   :  { %1379 = vmatmul.msk.bf16.vlgmr.msrb.gmra.mxu0 %vm190_vm3, %v589_v59 }
 0x5b8   :  { %v622_v61 = vpop.f32.mrf.mxu0 }
 0x5b9   :  { %v623_v50 = vadd.f32 %v1522_v60, %v622_v61 }
 0x5bb   :  { %v627_v62 = vadd.f32 %v623_v50, %v1764_v19 }
 0x5bd   :  { %v629_v63 = vsel %vm190_vm3, %v627_v62, 0.0  ;;  %v635_v40 = vmul.f32 %v627_v62, %v627_v62 }
 0x5be   :  { %630 = vadd.xlane.f32.xlu0 %v629_v63 }
 0x5bf   :  { %v637_v0 = vsel %vm190_vm3, %v635_v40, 0.0 }
 0x5c0   :  { %v624_v58 = vpop.f32.mrf.mxu0  ;;  %638 = vadd.xlane.f32.xlu1 %v637_v0 }
 0x5c1   :  { %v625_v1 = vadd.f32 %v1522_v60, %v624_v58 }
 0x5c3   :  { %v628_v2 = vadd.f32 %v625_v1, %v1766_v20  ;;  %v1441_v20 = vld [vmem:[%s2034_s2 + $0x10] sm:$0xff] }
 0x5c4   :  { %722 = vmatpush.bf16.msrb.mxu1 %v1441_v20 }
 0x5c5   :  { %v632_v3 = vsel %vm190_vm3, %v628_v2, 0.0  ;;  %v636_v4 = vmul.f32 %v628_v2, %v628_v2 }
 0x5c6   :  { %633 = vadd.xlane.f32.xlu2 %v632_v3 }
 0x5c7   :  { %v640_v5 = vsel %vm190_vm3, %v636_v4, 0.0 }
 0x5c8   :  { %641 = vadd.xlane.f32.xlu0 %v640_v5 }
 0x631   :  { %v631_v6 = vpop.xlane.xlu0 %630 }
 0x632   :  { %v643_v19 = vmul.f32 0.03125, %v631_v6 }
 0x633   :  { %v639_v7 = vpop.xlane.xlu1 %638 }
 0x634   :  { %v647_v10 = vmul.f32 %v643_v19, %v643_v19  ;;  %v645_v11 = vmul.f32 0.03125, %v639_v7  ;;  %v651_v35 = vsub.f32 %v627_v62, %v643_v19 }
 0x636   :  { %v649_v12 = vsub.f32 %v645_v11, %v647_v10 }
 0x638   :  { %v653_v9 = vadd.f32 1e-05, %v649_v12 }
 0x639   :  { %v634_v15 = vpop.xlane.xlu2 %633 }
 0x63a   :  { %1566 = vrsqrt.f32 %v653_v9  ;;  %v644_v16 = vmul.f32 0.03125, %v634_v15  ;;  %vm661_vm11 = vweird.f32 %v653_v9 }
 0x63b   :  { %v642_v17 = vpop.xlane.xlu0 %641 }
 0x63c   :  { %v648_v21 = vmul.f32 %v644_v16, %v644_v16  ;;  %v646_v32 = vmul.f32 0.03125, %v642_v17  ;;  %v652_v41 = vsub.f32 %v628_v2, %v644_v16 }
 0x63e   :  { %v650_v22 = vsub.f32 %v646_v32, %v648_v21 }
 0x640   :  { %v1567_v13 = vpop.eup %1566  ;;  %v654_v23 = vadd.f32 1e-05, %v650_v22 }
 0x641   :  { %v656_v14 = vmul.f32 %v1567_v13, %v653_v9  ;;  %vm662_vm10 = vweird.f32 %v1567_v13 }
 0x642   :  { %1568 = vrsqrt.f32 %v654_v23  ;;  %vm663_vm12 = vmor %vm661_vm11, %vm662_vm10  ;;  %vm671_vm14 = vweird.f32 %v654_v23 }
 0x643   :  { %v657_v24 = vmul.f32 %v1567_v13, %v656_v14 }
 0x645   :  { %v658_v25 = vmul.f32 0.5, %v657_v24 }
 0x647   :  { %v659_v27 = vsub.f32 1.5, %v658_v25 }
 0x648   :  { %v1569_v28 = vpop.eup %1568 }
 0x649   :  { %v660_v29 = vmul.f32 %v1567_v13, %v659_v27  ;;  %v666_v30 = vmul.f32 %v1569_v28, %v654_v23  ;;  %vm672_vm13 = vweird.f32 %v1569_v28 }
 0x64a   :  { %vm673_vm15 = vmor %vm671_vm14, %vm672_vm13 }
 0x64b   :  { %v667_v31 = vmul.f32 %v1569_v28, %v666_v30  ;;  %v664_v33 = vsel %vm663_vm12, %v1567_v13, %v660_v29 }
 0x64c   :  { %v675_v38 = vmul.f32 %v664_v33, %v651_v35 }
 0x64d   :  { %v668_v34 = vmul.f32 0.5, %v667_v31 }
 0x64e   :  { %v681_v43 = vmul.f32 %v1523_v37, %v675_v38 }
 0x64f   :  { %v669_v36 = vsub.f32 1.5, %v668_v34 }
 0x650   :  { %v1896_v47 = vadd.f32 %v1524_v45, %v681_v43 }
 0x651   :  { %v670_v39 = vmul.f32 %v1569_v28, %v669_v36 }
 0x653   :  { %v674_v42 = vsel %vm673_vm15, %v1569_v28, %v670_v39 }
 0x654   :  { %v676_v44 = vmul.f32 %v674_v42, %v652_v41 }
 0x656   :  { %v682_v46 = vmul.f32 %v1523_v37, %v676_v44 }
 0x658   :  { %v1898_v48 = vadd.f32 %v1524_v45, %v682_v46 }
 0x65a   :  { %v689_v49 = vpack.c.bf16 %v1898_v48, %v1896_v47 }
 0x65c   :  { %1393 = vmatmul.msk.bf16.vlgmr.msrb.gmra.mxu1 %vm190_vm3, %v689_v49 }
 0x6d9   :  { %v724_v51 = vpop.f32.mrf.mxu1 }
 0x6da   :  { %v725_v53 = vadd.f32 %v1525_v52, %v724_v51 }
 0x6dc   :  { %v749_v56 = vpack.c.bf16 %v725_v53, %v725_v53 }
 0x6de   :  { %v759_v60 = vunpack.c.l.b16 %v749_v56 }
 0x6e1   :  { %v726_v54 = vpop.f32.mrf.mxu1 }
 0x6e2   :  { %v727_v55 = vadd.f32 %v1525_v52, %v726_v54 }
 0x6e4   :  { %v1501_v57 = vpack.i.bf16 %v727_v55, %v725_v53  ;;  %v750_v59 = vpack.c.bf16 %v727_v55, %v727_v55 }
 0x6e6   :  { %1502 = vrot.lane.b32.xlu2 %v1501_v57, %s1635_s9  ;;  %1492 = vrot.lane.b32.xlu0 %v1501_v57, %s1636_s23  ;;  %v760_v61 = vunpack.c.l.b16 %v750_v59 }
 0x6e8   :  { %v1908_v50 = vpack.c.b16 %v760_v61, %v759_v60 }
 0x6ee   :  { %1497 = vrot.lane.b32.xlu0 %v1501_v57, %s1634_s22 }
 0x740   :  { %v1503_v62 = vpop.permute.xlu2 %1502 }
 0x741   :  { %v1505_v58 = vunpack.i.h.bf16 %v1503_v62  ;;  %v1504_v1 = vunpack.i.l.bf16 %v1503_v62 }
 0x743   :  { %v756_v6 = vpack.c.bf16 %v1505_v58, %v1505_v58  ;;  %v755_v19 = vpack.c.bf16 %v1504_v1, %v1504_v1 }
 0x745   :  { %v841_v12 = vunpack.c.l.b16 %v756_v6  ;;  %v840_v20 = vunpack.c.l.b16 %v755_v19 }
 0x747   :  { %v1917_v32 = vpack.c.b16 %v841_v12, %v840_v20 }
 0x758   :  { %v1493_v63 = vpop.permute.xlu0 %1492 }
 0x759   :  { %v1495_v40 = vunpack.i.h.bf16 %v1493_v63  ;;  %v1494_v0 = vunpack.i.l.bf16 %v1493_v63 }
 0x75b   :  { %v752_v2 = vpack.c.bf16 %v1495_v40, %v1495_v40  ;;  %v751_v3 = vpack.c.bf16 %v1494_v0, %v1494_v0 }
 0x75d   :  { %v787_v4 = vunpack.c.l.b16 %v752_v2  ;;  %v786_v5 = vunpack.c.l.b16 %v751_v3 }
 0x75f   :  { %v1911_v7 = vpack.c.b16 %v787_v4, %v786_v5 }
 0x760   :  { %v1498_v8 = vpop.permute.xlu0 %1497 }
 0x761   :  { %v1500_v10 = vunpack.i.h.bf16 %v1498_v8  ;;  %v1499_v11 = vunpack.i.l.bf16 %v1498_v8  ;;  %789 = vrot.lane.b32.xlu0 %v1911_v7, %s1637_s24 }
 0x763   :  { %v754_v9 = vpack.c.bf16 %v1500_v10, %v1500_v10  ;;  %v753_v15 = vpack.c.bf16 %v1499_v11, %v1499_v11 }
 0x765   :  { %v814_v16 = vunpack.c.l.b16 %v754_v9  ;;  %v813_v17 = vunpack.c.l.b16 %v753_v15 }
 0x767   :  { %v1915_v21 = vpack.c.b16 %v814_v16, %v813_v17 }
 0x769   :  { %816 = vrot.lane.b32.xlu1 %v1915_v21, %s1637_s24  ;;  %843 = vrot.lane.b32.xlu0 %v1917_v32, %s1637_s24 }
 0x771   :  { %762 = vrot.lane.b32.xlu0 %v1908_v50, %s1637_s24 }
 0x7d3   :  { %v790_v22 = vpop.permute.xlu0 %789 }
 0x7d4   :  { %v795_v13 = vsel %vm243_vm4, %v790_v22, 0 }
 0x7d5   :  { %804 = vmatpush.bf16.xpose.msrb.mxu3 %v795_v13 }
 0x7db   :  { %v817_v23 = vpop.permute.xlu1 %816  ;;  %v844_v14 = vpop.permute.xlu0 %843 }
 0x7dc   :  { %v822_v24 = vsel %vm243_vm4, %v817_v23, 0  ;;  %v849_v25 = vsel %vm243_vm4, %v844_v14, 0  ;;  %1395 = vmatmul.msk.bf16.vlgmr.msrb.gmra.mxu3 %vm243_vm4, %v1911_v7 }
 0x7dd   :  { %831 = vmatpush.bf16.xpose.msra.mxu0 %v822_v24  ;;  %858 = vmatpush.bf16.xpose.msra.mxu1 %v849_v25 }
 0x7e3   :  { %v763_v27 = vpop.permute.xlu0 %762 }
 0x7e4   :  { %v768_v28 = vsel %vm243_vm4, %v763_v27, 0  ;;  %1396 = vmatmul.msk.bf16.vlgmr.msra.gmra.mxu0 %vm243_vm4, %v1915_v21  ;;  %1397 = vmatmul.msk.bf16.vlgmr.msra.gmra.mxu1 %vm243_vm4, %v1917_v32 }
 0x7e5   :  { %777 = vmatpush.bf16.xpose.msrb.mxu2 %v768_v28 }
 0x7ec   :  { %1394 = vmatmul.msk.bf16.vlgmr.msrb.gmra.mxu2 %vm243_vm4, %v1908_v50 }
 0x85f   :  { %v806_v29 = vpop.f32.mrf.mxu3 }
 0x860   :  { %v867_v30 = vmul.f32 0.35355338, %v806_v29 }
 0x861   :  { %v833_v31 = vpop.f32.mrf.mxu0  ;;  %v860_v33 = vpop.f32.mrf.mxu1 }
 0x862   :  { %v869_v34 = vmul.f32 0.35355338, %v833_v31  ;;  %v875_v35 = vadd.f32 %v867_v30, %v1801_v18  ;;  %v871_v49 = vmul.f32 0.35355338, %v860_v33 }
 0x864   :  { %v887_v36 = vsel %vm361_vm7, %v875_v35, -inf  ;;  %v877_v37 = vadd.f32 %v869_v34, %v1801_v18  ;;  %v879_v59 = vadd.f32 %v871_v49, %v1801_v18 }
 0x865   :  { %888 = vmax.xlane.f32.xlu2 %v887_v36 }
 0x866   :  { %v893_v38 = vsel %vm361_vm7, %v877_v37, -inf  ;;  %v899_v61 = vsel %vm361_vm7, %v879_v59, -inf }
 0x867   :  { %894 = vmax.xlane.f32.xlu1 %v893_v38  ;;  %v808_v39 = vpop.f32.mrf.mxu3 }
 0x868   :  { %v868_v41 = vmul.f32 0.35355338, %v808_v39 }
 0x869   :  { %v835_v42 = vpop.f32.mrf.mxu0  ;;  %v862_v43 = vpop.f32.mrf.mxu1 }
 0x86a   :  { %v870_v44 = vmul.f32 0.35355338, %v835_v42  ;;  %v872_v45 = vmul.f32 0.35355338, %v862_v43  ;;  %v876_v46 = vadd.f32 %v868_v41, %v1806_v26 }
 0x86c   :  { %v890_v51 = vsel %vm361_vm7, %v876_v46, -inf  ;;  %v878_v52 = vadd.f32 %v870_v44, %v1806_v26  ;;  %v880_v53 = vadd.f32 %v872_v45, %v1806_v26 }
 0x86d   :  { %891 = vmax.xlane.f32.xlu0 %v890_v51 }
 0x86e   :  { %v896_v54 = vsel %vm361_vm7, %v878_v52, -inf  ;;  %v902_v55 = vsel %vm361_vm7, %v880_v53, -inf }
 0x86f   :  { %897 = vmax.xlane.f32.xlu2 %v896_v54  ;;  %903 = vmax.xlane.f32.xlu1 %v902_v55  ;;  %v779_v56 = vpop.f32.mrf.mxu2 }
 0x870   :  { %v865_v57 = vmul.f32 0.35355338, %v779_v56 }
 0x872   :  { %v873_v60 = vadd.f32 %v865_v57, %v1801_v18 }
 0x874   :  { %v881_v62 = vsel %vm361_vm7, %v873_v60, -inf }
 0x875   :  { %900 = vmax.xlane.f32.xlu0 %v899_v61 }
 0x877   :  { %882 = vmax.xlane.f32.xlu2 %v881_v62  ;;  %v781_v63 = vpop.f32.mrf.mxu2 }
 0x878   :  { %v866_v40 = vmul.f32 0.35355338, %v781_v63 }
 0x87a   :  { %v874_v0 = vadd.f32 %v866_v40, %v1806_v26 }
 0x87c   :  { %v884_v58 = vsel %vm361_vm7, %v874_v0, -inf }
 0x87d   :  { %885 = vmax.xlane.f32.xlu0 %v884_v58 }
 0x8d8   :  { %v889_v1 = vpop.xlane.xlu2 %888 }
 0x8d9   :  { %v907_v2 = vsub.f32 %v875_v35, %v889_v1 }
 0x8da   :  { %v895_v3 = vpop.xlane.xlu1 %894 }
 0x8db   :  { %v917_v4 = vmul.f32 1.442695, %v907_v2  ;;  %v909_v5 = vsub.f32 %v877_v37, %v895_v3 }
 0x8dd   :  { %1570 = vpow2.f32 %v917_v4  ;;  %v921_v18 = vmul.f32 1.442695, %v909_v5 }
 0x8df   :  { %1572 = vpow2.f32 %v921_v18 }
 0x8e0   :  { %v892_v6 = vpop.xlane.xlu0 %891 }
 0x8e1   :  { %v908_v13 = vsub.f32 %v876_v46, %v892_v6 }
 0x8e2   :  { %v898_v19 = vpop.xlane.xlu2 %897  ;;  %v904_v8 = vpop.xlane.xlu1 %903 }
 0x8e3   :  { %v1953_v10 = vpop.eup %1570  ;;  %v910_v11 = vsub.f32 %v878_v52, %v898_v19  ;;  %v912_v12 = vsub.f32 %v880_v53, %v904_v8  ;;  %v919_v27 = vmul.f32 1.442695, %v908_v13 }
 0x8e4   :  { %v935_v26 = vsel %vm361_vm7, %v1953_v10, 0.0 }
 0x8e5   :  { %v1573_v20 = vpop.eup %1572  ;;  %v923_v9 = vmul.f32 1.442695, %v910_v11  ;;  %v927_v15 = vmul.f32 1.442695, %v912_v12  ;;  %936 = vadd.xlane.f32.xlu1 %v935_v26 }
 0x8e6   :  { %v941_v16 = vsel %vm361_vm7, %v1573_v20, 0.0 }
 0x8e7   :  { %1574 = vpow2.f32 %v923_v9  ;;  %942 = vadd.xlane.f32.xlu0 %v941_v16 }
 0x8e8   :  { %1576 = vpow2.f32 %v927_v15  ;;  %v901_v17 = vpop.xlane.xlu0 %900 }
 0x8e9   :  { %v911_v22 = vsub.f32 %v879_v59, %v901_v17 }
 0x8ea   :  { %v883_v36 = vpop.xlane.xlu2 %882 }
 0x8eb   :  { %v925_v23 = vmul.f32 1.442695, %v911_v22  ;;  %v905_v37 = vsub.f32 %v873_v60, %v883_v36 }
 0x8ed   :  { %v1575_v14 = vpop.eup %1574  ;;  %1578 = vpow2.f32 %v925_v23  ;;  %v913_v39 = vmul.f32 1.442695, %v905_v37 }
 0x8ee   :  { %v1577_v24 = vpop.eup %1576  ;;  %v944_v25 = vsel %vm361_vm7, %v1575_v14, 0.0  ;;  %1580 = vpow2.f32 %v919_v27 }
 0x8ef   :  { %945 = vadd.xlane.f32.xlu1 %v944_v25  ;;  %v950_v28 = vsel %vm361_vm7, %v1577_v24, 0.0 }
 0x8f0   :  { %951 = vadd.xlane.f32.xlu0 %v950_v28  ;;  %v886_v34 = vpop.xlane.xlu0 %885 }
 0x8f1   :  { %v906_v35 = vsub.f32 %v874_v0, %v886_v34 }
 0x8f3   :  { %v1579_v29 = vpop.eup %1578  ;;  %v915_v38 = vmul.f32 1.442695, %v906_v35 }
 0x8f4   :  { %v947_v30 = vsel %vm361_vm7, %v1579_v29, 0.0  ;;  %v1581_v31 = vpop.eup %1580 }
 0x8f5   :  { %948 = vadd.xlane.f32.xlu2 %v947_v30  ;;  %v938_v33 = vsel %vm361_vm7, %v1581_v31, 0.0  ;;  %1582 = vpow2.f32 %v915_v38 }
 0x8f6   :  { %1584 = vpow2.f32 %v913_v39  ;;  %v1444_v39 = vld [vmem:[%s2036_s4 + $0x18] sm:$0xff] }
 0x8fb   :  { %v1583_v41 = vpop.eup %1582 }
 0x8fc   :  { %v1585_v42 = vpop.eup %1584 }
 0x8fd   :  { %939 = vadd.xlane.f32.xlu2 %v938_v33 }
 0x904   :  { %1057 = vrot.lane.b32.xlu0 %v1917_v32, %s1640_s25  ;;  %v932_v32 = vsel %vm361_vm7, %v1583_v41, 0.0 }
 0x908   :  { %1007 = vrot.lane.b32.xlu1 %v1911_v7, %s1640_s25  ;;  %v929_v7 = vsel %vm361_vm7, %v1585_v42, 0.0 }
 0x915   :  { %1032 = vrot.lane.b32.xlu2 %v1915_v21, %s1640_s25 }
 0x91d   :  { %982 = vrot.lane.b32.xlu2 %v1908_v50, %s1640_s25 }
 0x92e   :  { %933 = vadd.xlane.f32.xlu0 %v932_v32 }
 0x932   :  { %930 = vadd.xlane.f32.xlu1 %v929_v7 }
 0x958   :  { %v937_v21 = vpop.xlane.xlu1 %936 }
 0x95a   :  { %v943_v43 = vpop.xlane.xlu0 %942 }
 0x962   :  { %v946_v44 = vpop.xlane.xlu1 %945 }
 0x963   :  { %v952_v45 = vpop.xlane.xlu0 %951 }
 0x964   :  { %1586 = vrcp.f32 %v952_v45 }
 0x965   :  { %1588 = vrcp.f32 %v946_v44 }
 0x966   :  { %1590 = vrcp.f32 %v943_v43 }
 0x968   :  { %v949_v50 = vpop.xlane.xlu2 %948 }
 0x969   :  { %1592 = vrcp.f32 %v949_v50 }
 0x96a   :  { %v1587_v46 = vpop.eup %1586  ;;  %1594 = vrcp.f32 %v937_v21 }
 0x96b   :  { %v1589_v49 = vpop.eup %1588  ;;  %v968_v51 = vmul.f32 %v1587_v46, %v1577_v24 }
 0x96c   :  { %v1591_v52 = vpop.eup %1590  ;;  %v966_v53 = vmul.f32 %v1589_v49, %v1575_v14 }
 0x96d   :  { %v965_v55 = vmul.f32 %v1591_v52, %v1573_v20  ;;  %v976_v56 = vpack.c.bf16 %v968_v51, %v968_v51 }
 0x96e   :  { %v974_v61 = vpack.c.bf16 %v966_v53, %v966_v53 }
 0x96f   :  { %v1593_v54 = vpop.eup %1592  ;;  %v973_v40 = vpack.c.bf16 %v965_v55, %v965_v55  ;;  %v1055_v0 = vunpack.c.l.b16 %v976_v56 }
 0x970   :  { %v967_v57 = vmul.f32 %v1593_v54, %v1579_v29  ;;  %v940_v59 = vpop.xlane.xlu2 %939  ;;  %v1595_v60 = vpop.eup %1594  ;;  %v1030_v1 = vunpack.c.l.b16 %v974_v61 }
 0x971   :  { %1596 = vrcp.f32 %v940_v59  ;;  %v963_v63 = vmul.f32 %v1595_v60, %v1953_v10  ;;  %v1029_v18 = vunpack.c.l.b16 %v973_v40  ;;  %v1526_v60 = vld [vmem:[%s2037_s5 + $0x1] ss:$0 sm:$0xff] }
 0x972   :  { %v975_v62 = vpack.c.bf16 %v967_v57, %v967_v57 }
 0x973   :  { %v971_v5 = vpack.c.bf16 %v963_v63, %v963_v63  ;;  %v1031_v8 = vpack.c.b16 %v1030_v1, %v1029_v18 }
 0x974   :  { %v1054_v58 = vunpack.c.l.b16 %v975_v62 }
 0x975   :  { %v1004_v10 = vunpack.c.l.b16 %v971_v5 }
 0x976   :  { %v1056_v2 = vpack.c.b16 %v1055_v0, %v1054_v58  ;;  %v1058_v3 = vpop.permute.xlu0 %1057 }
 0x977   :  { %v1597_v4 = vpop.eup %1596  ;;  %1070 = vmatpush.bf16.msrb.mxu1 %v1058_v3 }
 0x978   :  { %v964_v6 = vmul.f32 %v1597_v4, %v1581_v31  ;;  %v1033_v19 = vpop.permute.xlu2 %1032 }
 0x979   :  { %1045 = vmatpush.bf16.msrb.mxu0 %v1033_v19 }
 0x97a   :  { %v972_v11 = vpack.c.bf16 %v964_v6, %v964_v6  ;;  %1401 = vmatmul.msk.bf16.vlgmr.msrb.gmra.mxu1 %vm361_vm7, %v1056_v2  ;;  %v1008_v12 = vpop.permute.xlu1 %1007  ;;  %v1527_v6 = vld [vmem:[#allocation2] ss:$0 sm:$0xff] }
 0x97b   :  { %1020 = vmatpush.bf16.msra.mxu3 %v1008_v12 }
 0x97c   :  { %v1005_v26 = vunpack.c.l.b16 %v972_v11  ;;  %1400 = vmatmul.msk.bf16.vlgmr.msrb.gmra.mxu0 %vm361_vm7, %v1031_v8 }
 0x97e   :  { %v1006_v20 = vpack.c.b16 %v1005_v26, %v1004_v10 }
 0x980   :  { %1399 = vmatmul.msk.bf16.vlgmr.msra.gmra.mxu3 %vm361_vm7, %v1006_v20  ;;  %v983_v9 = vpop.permute.xlu2 %982 }
 0x981   :  { %995 = vmatpush.bf16.msra.mxu2 %v983_v9 }
 0x985   :  { %1139 = vmatpush.bf16.msrb.mxu2 %v1444_v39 }
 0x9a1   :  { %v934_v15 = vpop.xlane.xlu0 %933 }
 0x9a2   :  { %1598 = vrcp.f32 %v934_v15 }
 0x9a5   :  { %v931_v16 = vpop.xlane.xlu1 %930 }
 0x9a6   :  { %1600 = vrcp.f32 %v931_v16 }
 0x9a8   :  { %v1599_v17 = vpop.eup %1598 }
 0x9a9   :  { %v962_v22 = vmul.f32 %v1599_v17, %v1583_v41  ;;  %v1443_v41 = vld [vmem:[%s2036_s4 + $0x10] sm:$0xff] }
 0x9aa   :  { %1140 = vmatpush.bf16.msrb.mxu2 %v1443_v41 }
 0x9ab   :  { %v970_v23 = vpack.c.bf16 %v962_v22, %v962_v22 }
 0x9ac   :  { %v1601_v13 = vpop.eup %1600 }
 0x9ad   :  { %v961_v14 = vmul.f32 %v1601_v13, %v1585_v42  ;;  %v980_v25 = vunpack.c.l.b16 %v970_v23 }
 0x9af   :  { %v969_v24 = vpack.c.bf16 %v961_v14, %v961_v14  ;;  %v1446_v14 = vld [vmem:[%s2042_s10 + $0x8] sm:$0xff] }
 0x9b0   :  { %1266 = vmatpush.bf16.msra.mxu0 %v1446_v14 }
 0x9b1   :  { %v979_v27 = vunpack.c.l.b16 %v969_v24 }
 0x9b3   :  { %v981_v28 = vpack.c.b16 %v980_v25, %v979_v27 }
 0x9b5   :  { %1398 = vmatmul.msk.bf16.vlgmr.msra.gmra.mxu2 %vm361_vm7, %v981_v28 }
 0x9f7   :  { %v1072_v34 = vpop.f32.mrf.mxu1 }
 0x9f9   :  { %v1047_v29 = vpop.f32.mrf.mxu0 }
 0x9ff   :  { %v1074_v37 = vpop.f32.mrf.mxu1 }
 0xa00   :  { %v1516_v38 = vpack.i.bf16 %v1074_v37, %v1072_v34 }
 0xa01   :  { %v1049_v30 = vpop.f32.mrf.mxu0 }
 0xa02   :  { %v1506_v31 = vpack.i.bf16 %v1049_v30, %v1047_v29 }
 0xa03   :  { %v1022_v33 = vpop.f32.mrf.mxu3 }
 0xa04   :  { %1507 = vrot.lane.b32.xlu2 %v1506_v31, %s1641_s26 }
 0xa0b   :  { %v1024_v35 = vpop.f32.mrf.mxu3 }
 0xa0c   :  { %v1511_v36 = vpack.i.bf16 %v1024_v35, %v1022_v33 }
 0xa0e   :  { %1512 = vrot.lane.b32.xlu2 %v1511_v36, %s1642_s27 }
 0xa16   :  { %1517 = vrot.lane.b32.xlu2 %v1516_v38, %s1643_s28  ;;  %v1528_v38 = vld [vmem:[%s2038_s6 + $0x1] ss:$0 sm:$0xff] }
 0xa38   :  { %v997_v42 = vpop.f32.mrf.mxu2 }
 0xa40   :  { %v999_v44 = vpop.f32.mrf.mxu2 }
 0xa5e   :  { %v1508_v32 = vpop.permute.xlu2 %1507 }
 0xa5f   :  { %v1510_v46 = vunpack.i.h.bf16 %v1508_v32  ;;  %v1509_v49 = vunpack.i.l.bf16 %v1508_v32 }
 0xa68   :  { %v1513_v7 = vpop.permute.xlu2 %1512 }
 0xa69   :  { %v1515_v21 = vunpack.i.h.bf16 %v1513_v7  ;;  %v1514_v43 = vunpack.i.l.bf16 %v1513_v7 }
 0xa6b   :  { %v1101_v45 = vsel %vm243_vm4, %v997_v42, %v1514_v43  ;;  %v1102_v50 = vsel %vm243_vm4, %v999_v44, %v1515_v21  ;;  %v1529_v21 = vld [vmem:[%s2039_s7 + $0x1] ss:$0 sm:$0xff] }
 0xa6c   :  { %v1103_v54 = vsel %vm361_vm7, %v1101_v45, %v1509_v49  ;;  %v1104_v55 = vsel %vm361_vm7, %v1102_v50, %v1510_v46  ;;  %v1211_v46 = vld [vmem:[%s2040_s8] sm:$0x1] }
 0xa6d   :  { %v1445_v49 = vld [vmem:[%s2042_s10] sm:$0xff] }
 0xa6e   :  { %1267 = vmatpush.bf16.msra.mxu0 %v1445_v49 }
 0xa70   :  { %v1518_v51 = vpop.permute.xlu2 %1517 }
 0xa71   :  { %v1520_v52 = vunpack.i.h.bf16 %v1518_v51  ;;  %v1519_v53 = vunpack.i.l.bf16 %v1518_v51 }
 0xa73   :  { %v1105_v56 = vsel %vm586_vm9, %v1103_v54, %v1519_v53  ;;  %v1106_v57 = vsel %vm586_vm9, %v1104_v55, %v1520_v52  ;;  %vm1283_vm9 = vcmask 1043456  }
 0xa74   :  { %v1107_v59 = vpack.c.bf16 %v1106_v57, %v1105_v56  ;;  %v1275_v56 = vld [vmem:[%s2044_s12] sm:$0xf]  ;;  %s1307_s12 = sshll.u32 %s1644_s21, 4  ;;  %s1308_s12 = int_to_ptr.vmem [resolvable:$true] %s1307_s12 }
 0xa75   :  { %v1285_v57 = vsel %vm1283_vm9, %v1275_v56, 0 }
 0xa76   :  { %1415 = vmatmul.msk.bf16.vlgmr.msrb.gmra.mxu2 %vm190_vm3, %v1107_v59  ;;  %1294 = vmatpush.bf16.msra.mxu1 %v1285_v57  ;;  %v1530_v59 = vld [vmem:[%s2043_s11] ss:$0 sm:$0xff] }
 0xaf9   :  { %v1142_v61 = vpop.f32.mrf.mxu2 }
 0xafa   :  { %v1143_v62 = vadd.f32 %v1526_v60, %v1142_v61 }
 0xafc   :  { %v1147_v63 = vadd.f32 %v1143_v62, %v1896_v47 }
 0xafe   :  { %v1149_v40 = vsel %vm190_vm3, %v1147_v63, 0.0  ;;  %v1155_v0 = vmul.f32 %v1147_v63, %v1147_v63 }
 0xaff   :  { %1150 = vadd.xlane.f32.xlu2 %v1149_v40 }
 0xb00   :  { %v1157_v58 = vsel %vm190_vm3, %v1155_v0, 0.0  ;;  %v1531_v0 = vld [vmem:[%s2045_s13] ss:$0 sm:$0xff] }
 0xb01   :  { %v1144_v1 = vpop.f32.mrf.mxu2  ;;  %1158 = vadd.xlane.f32.xlu0 %v1157_v58 }
 0xb02   :  { %v1145_v2 = vadd.f32 %v1526_v60, %v1144_v1 }
 0xb04   :  { %v1148_v3 = vadd.f32 %v1145_v2, %v1898_v48 }
 0xb06   :  { %v1152_v4 = vsel %vm190_vm3, %v1148_v3, 0.0  ;;  %v1156_v5 = vmul.f32 %v1148_v3, %v1148_v3 }
 0xb07   :  { %1153 = vadd.xlane.f32.xlu1 %v1152_v4 }
 0xb08   :  { %v1160_v18 = vsel %vm190_vm3, %v1156_v5, 0.0 }
 0xb0f   :  { %1161 = vadd.xlane.f32.xlu1 %v1160_v18 }
 0xb15   :  { %1217 = vperm.xlu0 %1460, %v1527_v6  }
 0xb72   :  { %v1151_v47 = vpop.xlane.xlu2 %1150 }
 0xb73   :  { %v1163_v19 = vmul.f32 0.03125, %v1151_v47 }
 0xb74   :  { %v1159_v8 = vpop.xlane.xlu0 %1158 }
 0xb75   :  { %v1167_v11 = vmul.f32 %v1163_v19, %v1163_v19  ;;  %v1165_v12 = vmul.f32 0.03125, %v1159_v8  ;;  %v1171_v35 = vsub.f32 %v1147_v63, %v1163_v19 }
 0xb77   :  { %v1169_v10 = vsub.f32 %v1165_v12, %v1167_v11 }
 0xb79   :  { %v1173_v26 = vadd.f32 1e-05, %v1169_v10 }
 0xb7a   :  { %v1154_v20 = vpop.xlane.xlu1 %1153 }
 0xb7b   :  { %1602 = vrsqrt.f32 %v1173_v26  ;;  %v1164_v9 = vmul.f32 0.03125, %v1154_v20  ;;  %vm1181_vm1 = vweird.f32 %v1173_v26 }
 0xb7d   :  { %v1168_v17 = vmul.f32 %v1164_v9, %v1164_v9  ;;  %v1172_v41 = vsub.f32 %v1148_v3, %v1164_v9 }
 0xb81   :  { %v1603_v48 = vpop.eup %1602 }
 0xb82   :  { %v1176_v15 = vmul.f32 %v1603_v48, %v1173_v26  ;;  %v1162_v16 = vpop.xlane.xlu1 %1161  ;;  %vm1182_vm0 = vweird.f32 %v1603_v48 }
 0xb83   :  { %v1166_v22 = vmul.f32 0.03125, %v1162_v16  ;;  %vm1183_vm2 = vmor %vm1181_vm1, %vm1182_vm0 }
 0xb84   :  { %v1177_v13 = vmul.f32 %v1603_v48, %v1176_v15 }
 0xb85   :  { %v1170_v23 = vsub.f32 %v1166_v22, %v1168_v17 }
 0xb86   :  { %v1178_v25 = vmul.f32 0.5, %v1177_v13 }
 0xb87   :  { %v1174_v24 = vadd.f32 1e-05, %v1170_v23  ;;  %v1218_v51 = vpop.permute.xlu0 %1217 }
 0xb88   :  { %v1179_v27 = vsub.f32 1.5, %v1178_v25 }
 0xb89   :  { %1604 = vrsqrt.f32 %v1174_v24  ;;  %vm1191_vm6 = vweird.f32 %v1174_v24 }
 0xb8a   :  { %v1180_v29 = vmul.f32 %v1603_v48, %v1179_v27 }
 0xb8c   :  { %v1184_v33 = vsel %vm1183_vm2, %v1603_v48, %v1180_v29 }
 0xb8d   :  { %v1195_v37 = vmul.f32 %v1184_v33, %v1171_v35 }
 0xb8f   :  { %v1605_v28 = vpop.eup %1604  ;;  %v1202_v7 = vmul.f32 %v1528_v38, %v1195_v37 }
 0xb90   :  { %v1186_v30 = vmul.f32 %v1605_v28, %v1174_v24  ;;  %vm1192_vm5 = vweird.f32 %v1605_v28 }
 0xb91   :  { %vm1193_vm8 = vmor %vm1191_vm6, %vm1192_vm5  ;;  %v1209_v44 = vadd.f32 %v1529_v21, %v1202_v7 }
 0xb92   :  { %v1187_v31 = vmul.f32 %v1605_v28, %v1186_v30 }
 0xb94   :  { %v1188_v34 = vmul.f32 0.5, %v1187_v31 }
 0xb96   :  { %v1189_v36 = vsub.f32 1.5, %v1188_v34 }
 0xb98   :  { %v1190_v39 = vmul.f32 %v1605_v28, %v1189_v36 }
 0xb9a   :  { %v1194_v32 = vsel %vm1193_vm8, %v1605_v28, %v1190_v39 }
 0xb9b   :  { %v1196_v42 = vmul.f32 %v1194_v32, %v1172_v41 }
 0xb9d   :  { %v1203_v43 = vmul.f32 %v1528_v38, %v1196_v42 }
 0xb9f   :  { %v1210_v45 = vadd.f32 %v1529_v21, %v1203_v43 }
 0xba1   :  { %v1212_v50 = vpack.c.bf16 %v1210_v45, %v1209_v44 }
 0xba3   :  { %1230 = vmatpush.bf16.msrb.mxu3 %v1212_v50 }
 0xba6   :  { %1418 = vmatmul.msk.bf16.vlgmr.msrb.gmra.mxu3 %vm361_vm7, %v1211_v46 }
 0xc29   :  { %v1232_v52 = vpop.f32.mrf.mxu3 }
 0xc2a   :  { %v1233_v53 = vadd.f32 %v1232_v52, %v1218_v51 }
 0xc2c   :  { %v1236_v54 = vpack.c.bf16 %v1233_v53, %v1233_v53 }
 0xc2e   :  { %1427 = vmatmul.msk.bf16.vlgmr.msra.gmra.mxu0 %vm190_vm3, %v1236_v54  ;;  %vm1300_vm3 = vcmask 25600  }
 0xc31   :  { %v1234_v55 = vpop.f32.mrf.mxu3 }
 0xcab   :  { %v1269_v60 = vpop.f32.mrf.mxu0 }
 0xcac   :  { %v1270_v61 = vadd.f32 %v1530_v59, %v1269_v60 }
 0xcae   :  { %v1273_v62 = vmax.f32 %v1270_v61, 0.0 }
 0xcb0   :  { %v1274_v63 = vpack.c.bf16 %v1273_v62, %v1273_v62 }
 0xcb2   :  { %1428 = vmatmul.msk.bf16.vlgmr.msra.gmra.mxu1 %vm243_vm4, %v1274_v63 }
 0xcb3   :  { %v1271_v40 = vpop.f32.mrf.mxu0 }
 0xd2f   :  { %v1296_v58 = vpop.f32.mrf.mxu1 }
 0xd30   :  { %v1297_v1 = vadd.f32 %v1531_v0, %v1296_v58 }
 0xd32   :  { %1301 = vst.msk [vmem:[#allocation3] sm:$0x3] %vm1300_vm3, %v1297_v1 }
 0xd33   :  { %1312 = dma.vmem_to_hbm [thread:$0]  %s1308_s12, 32, %s1310_s15, [#allocation4]  }
 0xd37   :  { %v1298_v2 = vpop.f32.mrf.mxu1 }
 0xd38   :  { %1630 = dma.done.wait [#allocation4], 32  }
 0xd39   :  { %1631 = vsyncadd [#allocation4], 4294967264 }
 0xd3a   :  { %1317 = vsyncpa [#allocation4], 1 }

</bundles_post_ra>
